<compile_context>
chip_gen: v7x
topology: tpu7x:2x2x1
jax: 0.10.0
libtpu: 0.0.40
codegen_flags: <defaults>
</compile_context>

<pallas_src>
import jax
import jax.numpy as jnp
from jax import lax
from jax.experimental import pallas as pl
from jax.experimental.pallas import tpu as pltpu

LANE = 128
_HALO = 16  # column halo in the VMEM ping-pong buffers: one bf16 sublane tile,
            # keeps every store / concat boundary tile-aligned.


def _round_up(x, m):
    return (x + m - 1) // m * m


# ----------------------------------------------------------------------------
# Fused ResRepConvBlock kernel (all layers + residual in one pallas_call)
# ----------------------------------------------------------------------------
def _make_block_kernel(L, H, W, Ht, Cp, n_bufs):
    nstrips = H // Ht

    def _strip_conv(rows, c0, w0, w1, w2, bias):
        # rows: (Ht+2, srcW, Cp) bf16; real columns live at [c0, c0 + W).
        # dx-concat (2 sublane-shifted copies, reused by all dy taps) ...
        col = jnp.concatenate(
            [rows[:, c0 - 1 + dx:c0 - 1 + dx + W, :] for dx in range(3)],
            axis=-1)                                        # (Ht+2, W, 3*Cp)
        # ... then 3 accumulated MXU dots; the dy slices are major-dim -> free.
        acc = jnp.dot(col[0:Ht].reshape(Ht * W, 3 * Cp), w0,
                      preferred_element_type=jnp.float32)
        acc = acc + jnp.dot(col[1:Ht + 1].reshape(Ht * W, 3 * Cp), w1,
                            preferred_element_type=jnp.float32)
        acc = acc + jnp.dot(col[2:Ht + 2].reshape(Ht * W, 3 * Cp), w2,
                            preferred_element_type=jnp.float32)
        return jnp.maximum(acc + bias, 0.0).reshape(Ht, W, Cp)   # f32

    def kernel(x_ref, w_ref, b_ref, out_ref, *bufs):
        # x_ref:   (H+2, W+2, Cp)        padded block input (batch n)
        # w_ref:   (L, 3, 3*Cp, Cp)      stacked folded 3x3 weights, bf16
        # b_ref:   (L, 1, Cp)            folded biases, f32
        # out_ref: (H, W, Cp)            block output (residual already added)
        # bufs:    ping-pong activation images (H+2, W + 2*_HALO, Cp), bf16
        #
        # Re-zero the top/bottom halo rows of the scratch buffers every grid
        # step (megacore may start a core at n > 0 with uninitialised scratch).
        # Column halos are rewritten with zeros by every interior-row store
        # below; padded channels stay zero via the zero-padded weights/bias.
        if n_bufs:
            zrow = jnp.zeros((1, W + 2 * _HALO, Cp), jnp.bfloat16)
            for buf in bufs:
                buf[0:1] = zrow
                buf[H + 1:H + 2] = zrow
        zcols = jnp.zeros((Ht, _HALO, Cp), jnp.bfloat16)

        for l in range(L):
            if l == 0:
                src, c0 = x_ref, 1
            else:
                src, c0 = bufs[(l - 1) % n_bufs], _HALO
            # hoist the three dy weight slabs and the bias (reused per strip)
            w0 = w_ref[l, 0]
            w1 = w_ref[l, 1]
            w2 = w_ref[l, 2]
            bias = b_ref[l]
            last = l == L - 1
            for t in range(nstrips):
                r0 = t * Ht
                rows = src[r0:r0 + Ht + 2]          # full-width, offset-0 read
                y = _strip_conv(rows, c0, w0, w1, w2, bias)   # (Ht, W, Cp) f32
                if last:
                    res_rows = x_ref[r0 + 1:r0 + 1 + Ht]
                    res = res_rows[:, 1:W + 1, :].astype(jnp.float32)
                    out_ref[r0:r0 + Ht] = (res + y).astype(out_ref.dtype)
                else:
                    # full-width, tile-aligned store: rewrites the zero column
                    # halos together with the interior strip.
                    bufs[l % n_bufs][r0 + 1:r0 + 1 + Ht] = jnp.concatenate(
                        [zcols, y.astype(jnp.bfloat16), zcols], axis=1)

    return kernel


def _vmem_limit_bytes():
    """Per-generation scoped-VMEM limit (review: 96 MiB-class on v5e/v6e, ~48 on v7x)."""
    cap = 64 * 1024 * 1024
    try:
        info = pltpu.get_tpu_info()
        cap = int(getattr(info, "vmem_capacity_bytes", cap)) or cap
    except Exception:
        pass
    return min(cap * 3 // 4, 100 * 1024 * 1024)


def _pick_ht(H, W, Cp, L, n_bufs, budget):
    """VMEM-budget-driven row-strip height (review item: account for W, Cp, L)."""
    fixed = (2 * (H + 2) * (W + 2) * Cp * 2          # x block, double-buffered, bf16
             + 2 * H * W * Cp * 2                    # out block, double-buffered, bf16
             + 2 * L * 9 * Cp * Cp * 2               # stacked weights, double-buffered
             + 2 * L * Cp * 4                        # biases
             + n_bufs * (H + 2) * (W + 2 * _HALO) * Cp * 2)   # ping-pong images
    # transients per strip row: dx-concat col (bf16) + f32 acc + padded result +
    # source row window; 1.5x slack for Mosaic temporaries.
    per_row = 3 * W * Cp * 2 + W * Cp * 4 + 2 * (W + 2 * _HALO) * Cp * 2
    per_row = per_row * 3 // 2
    ht_max = max((budget - fixed) // max(per_row, 1), 8)
    divs = [d for d in range(1, H + 1) if H % d == 0 and d <= ht_max] or [1]
    divs8 = [d for d in divs if d % 8 == 0]
    return max(divs8) if divs8 else max(divs)


def _resrep_block_pallas(xpad, w_stack, b_stack, H, W):
    N = xpad.shape[0]
    Cp = xpad.shape[-1]
    L = w_stack.shape[0]
    n_bufs = 0 if L == 1 else (1 if L == 2 else 2)
    vmem_limit = _vmem_limit_bytes()
    Ht = _pick_ht(H, W, Cp, L, n_bufs, budget=vmem_limit * 4 // 5)
    kernel = _make_block_kernel(L, H, W, Ht, Cp, n_bufs)

    flops = 2 * N * H * W * 9 * Cp * Cp * L
    bytes_accessed = int(xpad.size * 2 + w_stack.size * 2 + b_stack.size * 4
                         + N * H * W * Cp * 2)
    scratch = [pltpu.VMEM((H + 2, W + 2 * _HALO, Cp), jnp.bfloat16)
               for _ in range(n_bufs)]

    return pl.pallas_call(
        kernel,
        out_shape=jax.ShapeDtypeStruct((N, H, W, Cp), jnp.bfloat16),
        grid=(N,),
        in_specs=[
            pl.BlockSpec((None, H + 2, W + 2, Cp), lambda n: (n, 0, 0, 0)),
            pl.BlockSpec((L, 3, 3 * Cp, Cp), lambda n: (0, 0, 0, 0)),
            pl.BlockSpec((L, 1, Cp), lambda n: (0, 0, 0)),
        ],
        out_specs=pl.BlockSpec((None, H, W, Cp), lambda n: (n, 0, 0, 0)),
        scratch_shapes=scratch,
        compiler_params=pltpu.CompilerParams(
            dimension_semantics=("parallel",),
            vmem_limit_bytes=vmem_limit),
        cost_estimate=pl.CostEstimate(flops=flops, transcendentals=0,
                                      bytes_accessed=bytes_accessed),
    )(xpad, w_stack, b_stack)


# ----------------------------------------------------------------------------
# BN folding, RepConv re-parameterization, weight packing
# ----------------------------------------------------------------------------
def _fold_bn(p, eps=1e-5):
    s = p["gamma"] / jnp.sqrt(p["var"] + eps)
    return s, p["beta"] - p["mean"] * s


def _fold_conv_bn(p):
    """-> w:(3,3,Cin,Cout) with BN scale folded in, bias:(Cout,)."""
    s, b = _fold_bn(p)
    w = jnp.transpose(p["w"], (2, 3, 1, 0)) * s
    return w, b


def _fold_repconv(p3, p1):
    """RepVGG fusion: BN(conv1x1) folded into the centre tap of the folded 3x3."""
    w, b = _fold_conv_bn(p3)
    s1, b1 = _fold_bn(p1)
    w1 = jnp.transpose(p1["w"][:, :, 0, 0], (1, 0)) * s1            # (Cin, Cout)
    return w.at[1, 1].add(w1), b + b1


def _pack_w(w, cpad):
    """(3,3,Cin,Cout) f32 -> (3, 3*cpad, cpad) bf16, zero channel pad.
    Last-dim order of the 3*cpad axis is (dx, cin) to match the kernel's col."""
    _, _, cin, cout = w.shape
    wp = jnp.zeros((3, 3, cpad, cpad), jnp.float32).at[:, :, :cin, :cout].set(w)
    return wp.reshape(3, 3 * cpad, cpad).astype(jnp.bfloat16)


def _pack_b(b, cpad):
    return jnp.zeros((1, cpad), jnp.float32).at[0, :b.shape[0]].set(b)


# ----------------------------------------------------------------------------
# Parameter init + module assembly (mirrors ResRepConvBlock.__init__ shapes)
# ----------------------------------------------------------------------------
def init_conv(key, cin, cout, k):
    kw, k1, k2, k3, k4 = jax.random.split(key, 5)
    return {
        "w": 0.1 * jax.random.normal(kw, (cout, cin, k, k), jnp.float32),
        "gamma": 1.0 + 0.1 * jax.random.normal(k1, (cout,), jnp.float32),
        "beta": 0.1 * jax.random.normal(k2, (cout,), jnp.float32),
        "mean": 0.1 * jax.random.normal(k3, (cout,), jnp.float32),
        "var": jax.random.uniform(k4, (cout,), jnp.float32, minval=0.5, maxval=1.5),
    }


def make_resrepconv_block(key, in_channels, repeat=1, ratio=1.0):
    h = int(in_channels * ratio)
    keys = jax.random.split(key, 2 * repeat + 2)
    layers = []
    if repeat == 1:
        # cv1 = Conv(C, C, 3); cb = cv2 = Identity
        layers.append(("conv_res", init_conv(keys[0], in_channels, in_channels, 3)))
    else:
        # cv1 = RepConv(C, h, 3)
        layers.append(("repconv", (init_conv(keys[0], in_channels, h, 3),
                                   init_conv(keys[1], in_channels, h, 1))))
        ki = 2
        # cb = Sequential(RepConv(C, C, 3) x (repeat - 2))
        for _ in range(max(repeat - 2, 0)):
            layers.append(("repconv", (init_conv(keys[ki], in_channels, in_channels, 3),
                                       init_conv(keys[ki + 1], in_channels, in_channels, 1))))
            ki += 2
        # cv2 = Conv(h, C, 3)
        layers.append(("conv_res", init_conv(keys[ki], h, in_channels, 3)))
    return layers


def resrepconv_forward(layers, x_nchw):
    N, C, H, W = x_nchw.shape
    folded = []
    for kind, p in layers:
        w, b = _fold_repconv(*p) if kind == "repconv" else _fold_conv_bn(p)
        folded.append((w, b))
    cmax = max(max(w.shape[2], w.shape[3]) for w, _ in folded)
    cpad = _round_up(max(cmax, C), LANE)
    w_stack = jnp.stack([_pack_w(w, cpad) for w, _ in folded])       # (L,3,3cp,cp)
    b_stack = jnp.stack([_pack_b(b, cpad) for _, b in folded])       # (L,1,cp)

    x = jnp.transpose(x_nchw, (0, 2, 3, 1)).astype(jnp.bfloat16)     # NCHW -> NHWC
    # single halo + lane pad for the whole block (no per-layer pads any more)
    xp = jnp.pad(x, ((0, 0), (1, 1), (1, 1), (0, cpad - C)))
    y = _resrep_block_pallas(xp, w_stack, b_stack, H, W)
    out = y[..., :C].astype(x_nchw.dtype)
    return jnp.transpose(out, (0, 3, 1, 2))                          # NHWC -> NCHW


# ----------------------------------------------------------------------------
# Pure-JAX f32 reference (unfused, mirrors the PyTorch module)
# ----------------------------------------------------------------------------
def _ref_conv_bn(x_nhwc, p, k, act):
    pad = (k - 1) // 2
    w_hwio = jnp.transpose(p["w"], (2, 3, 1, 0))
    y = lax.conv_general_dilated(x_nhwc, w_hwio, (1, 1), [(pad, pad), (pad, pad)],
                                 dimension_numbers=("NHWC", "HWIO", "NHWC"))
    scale, bias = _fold_bn(p)
    y = y * scale + bias
    return jnp.maximum(y, 0.0) if act else y


def ref_forward(layers, x_nchw):
    x = jnp.transpose(x_nchw, (0, 2, 3, 1))
    y = x
    for kind, p in layers:
        if kind == "repconv":
            y = jnp.maximum(_ref_conv_bn(y, p[0], 3, False)
                            + _ref_conv_bn(y, p[1], 1, False), 0.0)
        else:
            y = x + _ref_conv_bn(y, p, 3, True)
    return jnp.transpose(y, (0, 3, 1, 2))


# ----------------------------------------------------------------------------
if __name__ == "__main__":
    key = jax.random.PRNGKey(0)
    kx, kp1, kp2 = jax.random.split(key, 3)

    N, C, H, W = 2, 8, 16, 16
    x = jax.random.normal(kx, (N, C, H, W), jnp.float32)             # PyTorch NCHW input

    for repeat, kp in ((1, kp1), (3, kp2)):
        layers = make_resrepconv_block(kp, C, repeat=repeat, ratio=1.0)
        out = jax.block_until_ready(resrepconv_forward(layers, x))
        ref = ref_forward(layers, x)
        assert out.shape == (N, C, H, W), out.shape
        # bf16 activations/weights vs f32 reference -> loosened tolerance
        assert jnp.allclose(out, ref, atol=5e-2, rtol=5e-2), f"mismatch at repeat={repeat}"

    print("KERNEL_OK")
</pallas_src>

<mosaic_0001>
module attributes {stable_mosaic.version = 11 : i64} {
  func.func @kernel(%arg0: i32, %arg1: memref<1x18x18x128xbf16, #tpu.memory_space<vmem>>, %arg2: memref<1x3x384x128xbf16, #tpu.memory_space<vmem>>, %arg3: memref<1x1x128xf32, #tpu.memory_space<vmem>>, %arg4: memref<1x16x16x128xbf16, #tpu.memory_space<vmem>>) attributes {dimension_semantics = [#tpu.dimension_semantics<parallel>], iteration_bounds = array<i64: 2>, scalar_prefetch = 0 : i64, scratch_operands = 0 : i64, tpu.core_type = #tpu.core_type<tc>, window_params = [{transform_indices = @transform_0, window_bounds = array<i64: 1, 18, 18, 128>}, {pipeline_mode = #tpu.pipeline_mode<synchronous>, transform_indices = @transform_1, window_bounds = array<i64: 1, 3, 384, 128>}, {pipeline_mode = #tpu.pipeline_mode<synchronous>, transform_indices = @transform_2, window_bounds = array<i64: 1, 1, 128>}, {transform_indices = @transform_3, window_bounds = array<i64: 1, 16, 16, 128>}]} {
    %c0 = arith.constant 0 : index
    %c0_0 = arith.constant 0 : index
    %c0_1 = arith.constant 0 : index
    %c0_2 = arith.constant 0 : index
    %0 = vector.load %arg2[%c0, %c0_0, %c0_1, %c0_2] : memref<1x3x384x128xbf16, #tpu.memory_space<vmem>>, vector<1x1x384x128xbf16>
    %1 = vector.shape_cast %0 : vector<1x1x384x128xbf16> to vector<384x128xbf16>
    %c0_3 = arith.constant 0 : index
    %c1 = arith.constant 1 : index
    %c0_4 = arith.constant 0 : index
    %c0_5 = arith.constant 0 : index
    %2 = vector.load %arg2[%c0_3, %c1, %c0_4, %c0_5] : memref<1x3x384x128xbf16, #tpu.memory_space<vmem>>, vector<1x1x384x128xbf16>
    %3 = vector.shape_cast %2 : vector<1x1x384x128xbf16> to vector<384x128xbf16>
    %c0_6 = arith.constant 0 : index
    %c2 = arith.constant 2 : index
    %c0_7 = arith.constant 0 : index
    %c0_8 = arith.constant 0 : index
    %4 = vector.load %arg2[%c0_6, %c2, %c0_7, %c0_8] : memref<1x3x384x128xbf16, #tpu.memory_space<vmem>>, vector<1x1x384x128xbf16>
    %5 = vector.shape_cast %4 : vector<1x1x384x128xbf16> to vector<384x128xbf16>
    %c0_9 = arith.constant 0 : index
    %c0_10 = arith.constant 0 : index
    %c0_11 = arith.constant 0 : index
    %6 = vector.load %arg3[%c0_9, %c0_10, %c0_11] : memref<1x1x128xf32, #tpu.memory_space<vmem>>, vector<1x1x128xf32>
    %7 = vector.shape_cast %6 : vector<1x1x128xf32> to vector<1x128xf32>
    %c0_12 = arith.constant 0 : index
    %c0_13 = arith.constant 0 : index
    %c0_14 = arith.constant 0 : index
    %c0_15 = arith.constant 0 : index
    %8 = vector.load %arg1[%c0_12, %c0_13, %c0_14, %c0_15] : memref<1x18x18x128xbf16, #tpu.memory_space<vmem>>, vector<1x18x18x128xbf16>
    %9 = vector.shape_cast %8 : vector<1x18x18x128xbf16> to vector<18x18x128xbf16>
    %10 = vector.extract_strided_slice %9 {offsets = [0, 0, 0], sizes = [18, 16, 128], strides = [1, 1, 1]} : vector<18x18x128xbf16> to vector<18x16x128xbf16>
    %11 = vector.extract_strided_slice %9 {offsets = [0, 1, 0], sizes = [18, 16, 128], strides = [1, 1, 1]} : vector<18x18x128xbf16> to vector<18x16x128xbf16>
    %12 = vector.extract_strided_slice %9 {offsets = [0, 2, 0], sizes = [18, 16, 128], strides = [1, 1, 1]} : vector<18x18x128xbf16> to vector<18x16x128xbf16>
    %13 = tpu.concatenate %10, %11, %12 in 2 : vector<18x16x128xbf16>, vector<18x16x128xbf16>, vector<18x16x128xbf16> -> vector<18x16x384xbf16>
    %14 = vector.extract_strided_slice %13 {offsets = [0, 0, 0], sizes = [16, 16, 384], strides = [1, 1, 1]} : vector<18x16x384xbf16> to vector<16x16x384xbf16>
    %15 = vector.shape_cast %14 : vector<16x16x384xbf16> to vector<256x384xbf16>
    %cst = arith.constant dense<0.000000e+00> : vector<256x128xf32>
    %16 = tpu.matmul %15, %1, %cst {dimension_numbers = #tpu.dot_dimension_numbers<[1], [0], [0], [1], [0, 0, 1, 1], [], []>} : vector<256x384xbf16>, vector<384x128xbf16>, vector<256x128xf32> -> vector<256x128xf32>
    %17 = vector.extract_strided_slice %13 {offsets = [1, 0, 0], sizes = [16, 16, 384], strides = [1, 1, 1]} : vector<18x16x384xbf16> to vector<16x16x384xbf16>
    %18 = vector.shape_cast %17 : vector<16x16x384xbf16> to vector<256x384xbf16>
    %cst_16 = arith.constant dense<0.000000e+00> : vector<256x128xf32>
    %19 = tpu.matmul %18, %3, %cst_16 {dimension_numbers = #tpu.dot_dimension_numbers<[1], [0], [0], [1], [0, 0, 1, 1], [], []>} : vector<256x384xbf16>, vector<384x128xbf16>, vector<256x128xf32> -> vector<256x128xf32>
    %20 = arith.addf %16, %19 : vector<256x128xf32>
    %21 = vector.extract_strided_slice %13 {offsets = [2, 0, 0], sizes = [16, 16, 384], strides = [1, 1, 1]} : vector<18x16x384xbf16> to vector<16x16x384xbf16>
    %22 = vector.shape_cast %21 : vector<16x16x384xbf16> to vector<256x384xbf16>
    %cst_17 = arith.constant dense<0.000000e+00> : vector<256x128xf32>
    %23 = tpu.matmul %22, %5, %cst_17 {dimension_numbers = #tpu.dot_dimension_numbers<[1], [0], [0], [1], [0, 0, 1, 1], [], []>} : vector<256x384xbf16>, vector<384x128xbf16>, vector<256x128xf32> -> vector<256x128xf32>
    %24 = arith.addf %20, %23 : vector<256x128xf32>
    %25 = vector.broadcast %7 : vector<1x128xf32> to vector<256x128xf32>
    %26 = arith.addf %24, %25 : vector<256x128xf32>
    %cst_18 = arith.constant 0.000000e+00 : f32
    %27 = vector.broadcast %cst_18 : f32 to vector<256x128xf32>
    %28 = arith.maximumf %26, %27 : vector<256x128xf32>
    %29 = vector.shape_cast %28 : vector<256x128xf32> to vector<16x16x128xf32>
    %c0_19 = arith.constant 0 : index
    %c1_20 = arith.constant 1 : index
    %c0_21 = arith.constant 0 : index
    %c0_22 = arith.constant 0 : index
    %30 = vector.load %arg1[%c0_19, %c1_20, %c0_21, %c0_22] : memref<1x18x18x128xbf16, #tpu.memory_space<vmem>>, vector<1x16x18x128xbf16>
    %31 = vector.shape_cast %30 : vector<1x16x18x128xbf16> to vector<16x18x128xbf16>
    %32 = vector.extract_strided_slice %31 {offsets = [0, 1, 0], sizes = [16, 16, 128], strides = [1, 1, 1]} : vector<16x18x128xbf16> to vector<16x16x128xbf16>
    %33 = arith.extf %32 : vector<16x16x128xbf16> to vector<16x16x128xf32>
    %34 = arith.addf %33, %29 : vector<16x16x128xf32>
    %35 = arith.truncf %34 : vector<16x16x128xf32> to vector<16x16x128xbf16>
    %c0_23 = arith.constant 0 : index
    %c0_24 = arith.constant 0 : index
    %c0_25 = arith.constant 0 : index
    %c0_26 = arith.constant 0 : index
    %36 = vector.load %arg4[%c0_23, %c0_24, %c0_25, %c0_26] : memref<1x16x16x128xbf16, #tpu.memory_space<vmem>>, vector<1x16x16x128xbf16>
    %37 = vector.shape_cast %36 : vector<1x16x16x128xbf16> to vector<16x16x128xbf16>
    %38 = vector.shape_cast %35 : vector<16x16x128xbf16> to vector<1x16x16x128xbf16>
    tpu.vector_store %arg4[%c0_23, %c0_24, %c0_25, %c0_26], %38 {strides = array<i32>} : memref<1x16x16x128xbf16, #tpu.memory_space<vmem>>, vector<1x16x16x128xbf16>,
    return
  }
  func.func @transform_0(%arg0: i32) -> (i32, i32, i32, i32) {
    %c0_i32 = arith.constant 0 : i32
    %c0_i32_0 = arith.constant 0 : i32
    %c0_i32_1 = arith.constant 0 : i32
    %c0_i32_2 = arith.constant 0 : i32
    return %arg0, %c0_i32, %c0_i32_0, %c0_i32_1 : i32, i32, i32, i32
  }
  func.func @transform_1(%arg0: i32) -> (i32, i32, i32, i32) {
    %c0_i32 = arith.constant 0 : i32
    %c0_i32_0 = arith.constant 0 : i32
    %c0_i32_1 = arith.constant 0 : i32
    %c0_i32_2 = arith.constant 0 : i32
    %c0_i32_3 = arith.constant 0 : i32
    return %c0_i32, %c0_i32_0, %c0_i32_1, %c0_i32_2 : i32, i32, i32, i32
  }
  func.func @transform_2(%arg0: i32) -> (i32, i32, i32) {
    %c0_i32 = arith.constant 0 : i32
    %c0_i32_0 = arith.constant 0 : i32
    %c0_i32_1 = arith.constant 0 : i32
    %c0_i32_2 = arith.constant 0 : i32
    return %c0_i32, %c0_i32_0, %c0_i32_1 : i32, i32, i32
  }
  func.func @transform_3(%arg0: i32) -> (i32, i32, i32, i32) {
    %c0_i32 = arith.constant 0 : i32
    %c0_i32_0 = arith.constant 0 : i32
    %c0_i32_1 = arith.constant 0 : i32
    %c0_i32_2 = arith.constant 0 : i32
    return %arg0, %c0_i32, %c0_i32_0, %c0_i32_1 : i32, i32, i32, i32
  }
}

</mosaic_0001>

<bundles_post_ra>
// kernel: tpu_custom_call.1
= control target key start
LH: loop header
LB: loop body
LE: loop exit
PB: predicated region body
PF: predicated region fallthrough
CT: control target
= control target key end

     0   :  { %8 = vsyncpa [#allocation3], 0  ;;  %s6336_s0 = inlined_call_operand.vmem [shape: bf16[2,18,18,128], index: 0, kind: input, shape index: {}]   ;;  %s6337_s1 = inlined_call_operand.vmem [shape: bf16[1,3,384,128], index: 1, kind: input, shape index: {}]   ;;  %s6338_s2 = inlined_call_operand.vmem [shape: f32[1,1,128], index: 2, kind: input, shape index: {}]   ;;  %s6339_s3 = inlined_call_operand.hbm [shape: bf16[2,16,16,128], index: 3, kind: output, shape index: {}]  }
   0x1   :  { %10 = vsyncpa [#allocation3 + $0x1], 0  ;;  %s4678_s12 = smov 0   ;;  %s4680_s13 = smov 0  }
   0x2   :  { %s4682_s14 = smov 0   ;;  %s4684_s15 = smov 0  }
   0x3 LB: > { %s4699_s16 = sadd.s32 4294967295, %s4653_s15   ;;  %s3302_s17 = sadd.s32 4294967294, %s4653_s15   ;;  %s4653_s15 = sphi %s4684_s15, %s6483_s15   ;;  %s4649_s14 = sphi %s4682_s14, %s6482_s14   ;;  %s4645_s13 = sphi %s4680_s13, %s6481_s13   ;;  %s4641_s12 = sphi %s4678_s12, %s6480_s12  }
   0x4   : > { %s4703_s18 = sadd.s32 1, %s4653_s15   ;;  %s91_s19 = sadd.s32 1, %s4649_s14 }
   0x5   : > { %s88_s20 = ssub.s32 %s4653_s15, %s4703_s18  ;;  %p101_p0 = scmp.ne.s32.totalorder %s4649_s14, %s4645_s13 }
   0x6   : > { %p89_p1 = scmp.eq.s32.totalorder %s88_s20, 0  ;;  %p102_p2 = scmp.eq.s32.totalorder %s4699_s16, 1 }
   0x7   : > { %p107_p3 = scmp.ne.s32.totalorder %s4645_s13, %s4641_s12  ;;  %p108_p4 = scmp.eq.s32.totalorder %s3302_s17, 1 }
   0x8   : > { %s4714_s21 = scalar_select %p89_p1, %s4649_s14, %s91_s19  }
   0x9   : > { %p4716_p5 = por %p102_p2, %p101_p0  ;;  %p4720_p6 = por %p108_p4, %p107_p3 }
   0xa   : > { %p3305_p7 = scmp.ge.s32.totalorder %s4653_s15, 1  ;;  %p140_p8 = scmp.lt.s32.totalorder %s4653_s15, 3 }
   0xc   : > { %p141_p9 = pnand %p3305_p7, %p140_p8 }
   0xe   : > { %144 = sbr.rel (%p141_p9) target bundleno = 660 (0x294), region = 32 }
  0x15   : > { %v4473_v0 = vld [vmem:[%s6337_s1 + $0x100] sm:$0xff]   ;;  %v4476_v3 = vld [vmem:[%s6337_s1 + $0x108] sm:$0xff]   ;;  %v4479_v6 = vld [vmem:[%s6337_s1 + $0x110] sm:$0xff]   ;;  %p164_p10 = scmp.lt.s32.totalorder %s4699_s16, 1  ;;  %vm768_vm0 = vcmask 1046528   ;;  %vm2470_vm2 = vcmask 1040384  }
  0x16   : > { %v4732_v1 = vld [vmem:[%s6337_s1 + $0x140] sm:$0xff]   ;;  %3703 = vmatprep.subr.bf16.mxu0 %v4473_v0  ;;  %v4745_v4 = vld [vmem:[%s6337_s1 + $0x148] sm:$0xff]   ;;  %v4757_v7 = vld [vmem:[%s6337_s1 + $0x150] sm:$0xff]   ;;  %vm533_vm1 = vsmask.f32 7424  ;;  %s161_s10 = sand.u32 1, %s4645_s13  }
  0x17   : > { %v4475_v2 = vld [vmem:[%s6337_s1 + $0xc0] sm:$0xff]   ;;  %4255 = vmatprep.subr.bf16.mxu1 %v4732_v1  ;;  %v4478_v5 = vld [vmem:[%s6337_s1 + $0xc8] sm:$0xff]   ;;  %v4481_v8 = vld [vmem:[%s6337_s1 + $0xd0] sm:$0xff]   ;;  %s165_s7 = scalar_select %p164_p10, %s4699_s16, 1  ;;  %vm2775_vm3 = vsmask.f32 3328 }
  0x18   : > { %3704 = vmatpush3.bf16.msra.mxu0 %v4475_v2  ;;  %4263 = vmatpush3.bf16.msra.mxu1 %v4732_v1  ;;  %v4482_v9 = vld [vmem:[%s6337_s1 + $0x118] sm:$0xff]   ;;  %v4485_v12 = vld [vmem:[%s6337_s1 + $0x120] sm:$0xff]   ;;  %v4488_v15 = vld [vmem:[%s6337_s1 + $0x128] sm:$0xff]   ;;  %vm2776_vm4 = vsmask.f32 7440  ;;  %s5849_s11 = sshll.u32 %s161_s10, 7 }
  0x19   : > { %3705 = vmatprep.subr.bf16.mxu0 %v4476_v3  ;;  %4256 = vmatprep.subr.bf16.mxu1 %v4745_v4  ;;  %v4770_v10 = vld [vmem:[%s6337_s1 + $0x158] sm:$0xff]   ;;  %v4784_v13 = vld [vmem:[%s6337_s1 + $0x160] sm:$0xff]   ;;  %v4798_v16 = vld [vmem:[%s6337_s1 + $0x168] sm:$0xff]   ;;  %s4431_s20 = smul.u32 216, %s165_s7  ;;  %s5868_s17 = scalar_lea.vmem [#allocation2], %s5849_s11 }
  0x1a   : > { %v4484_v11 = vld [vmem:[%s6337_s1 + $0xd8] sm:$0xff]   ;;  %v4487_v14 = vld [vmem:[%s6337_s1 + $0xe0] sm:$0xff]   ;;  %v4490_v17 = vld [vmem:[%s6337_s1 + $0xe8] sm:$0xff]   ;;  %s3240_s24 = sshll.u32 %s5868_s17, 4  ;;  %s4655_s29 = smov [#allocation2]   ;;  %s6287_s24 = int_to_ptr.vmem [resolvable:$true] %s3240_s24 }
  0x1b   : > { %v4491_v18 = vld [vmem:[%s6337_s1 + $0x130] sm:$0xff]   ;;  %s4819_s7 = scalar_lea.vmem %s6336_s0, %s4431_s20  ;;  %v4494_v21 = vld [vmem:[%s6337_s1 + $0x138] sm:$0xff]   ;;  %v4503_v35 = vld [vmem:[%s6337_s1 + $0x40] sm:$0xff]   ;;  %s4591_s28 = scalar_lea.vmem %s6287_s24, 2048 }
  0x1c   : > { %3706 = vmatpush3.bf16.msra.mxu0 %v4478_v5  ;;  %4264 = vmatpush3.bf16.msra.mxu1 %v4745_v4  ;;  %v4811_v19 = vld [vmem:[%s6337_s1 + $0x170] sm:$0xff]   ;;  %v4827_v22 = vld [vmem:[%s6337_s1 + $0x178] sm:$0xff]   ;;  %v4860_v37 = vld [vmem:[%s4819_s7 + $0x80] ss:$0 sps:$4 sm:$0x11]   ;;  %p4592_p11 = scmp.ne.s32.totalorder %s6287_s24, %s4591_s28  ;;  %s4595_s30 = sshll.u32 %s4655_s29, 4  ;;  %s4596_s30 = int_to_ptr.vmem [resolvable:$false] %s4595_s30 }
  0x1d   : > { %3707 = vmatprep.subr.bf16.mxu0 %v4479_v6  ;;  %4257 = vmatprep.subr.bf16.mxu1 %v4757_v7  ;;  %v4493_v20 = vld [vmem:[%s6337_s1 + $0xf0] sm:$0xff]   ;;  %v4496_v25 = vld [vmem:[%s6337_s1 + $0xf8] sm:$0xff]   ;;  %v4504_v39 = vld [vmem:[%s6337_s1] sm:$0xff]   ;;  %v800_v42 = vrot.slane %v4860_v37, 1  ;;  %s4597_s4 = scalar_lea.vmem %s4596_s30, 4096  ;;  %p4598_p0 = scmp.lt.s32.totalorder %s6287_s24, %s4596_s30 }
  0x1e   : > { %v4832_v23 = vld [vmem:[%s4819_s7 + $0xc] sm:$0xff]   ;;  %v4835_v24 = vld [vmem:[%s4819_s7 + $0x14] ss:$0 sps:$4 sm:$0x11]   ;;  %v4851_v31 = vld [vmem:[%s4819_s7 + $0x78] sm:$0xff]   ;;  %p4593_p12 = pnand %p4592_p11, %p4716_p5  ;;  %p4599_p1 = scmp.lt.s32.totalorder %s4597_s4, %s4591_s28 }
  0x1f   : > { %v547_v26 = vshrl.u32 %v4832_v23, 16  ;;  %v549_v27 = vshll.u32 %v4832_v23, 16  ;;  %v554_v28 = vshll.u32 %v4835_v24, 16  ;;  %v4844_v29 = vld [vmem:[%s4819_s7 + $0x6c] sm:$0xff]   ;;  %v799_v38 = vrot.slane %v4851_v31, 1  ;;  %v4889_v47 = vld [vmem:[%s4819_s7 + $0x18] sm:$0xff]   ;;  %vm5857_vm5 = vmor %vm2775_vm3, %vm2776_vm4 }
  0x20   : > { %3708 = vmatpush3.bf16.msra.mxu0 %v4481_v8  ;;  %4265 = vmatpush3.bf16.msra.mxu1 %v4757_v7  ;;  %v4848_v30 = vld [vmem:[%s4819_s7 + $0x74] ss:$0 sps:$4 sm:$0x11]   ;;  %v796_v34 = vrot.slane %v4844_v29, 1  ;;  %v4505_v43 = vld [vmem:[%s6337_s1 + $0x48] sm:$0xff]   ;;  %v559_v49 = vshrl.u32 %v4889_v47, 16  ;;  %p4594_p13 = pneg %p4593_p12  ;;  %p4600_p2 = por %p4599_p1, %p4598_p0 }
  0x21   : > { %3709 = vmatprep.subr.bf16.mxu0 %v4482_v9  ;;  %4258 = vmatprep.subr.bf16.mxu1 %v4770_v10  ;;  %v551_v32 = vrot.slane %v549_v27, 1  ;;  %v556_v33 = vrot.slane %v554_v28, 1  ;;  %v797_v36 = vrot.slane %v4848_v30, 1  ;;  %v4881_v45 = vsel %vm768_vm0, %v799_v38, %v800_v42  ;;  %v4506_v46 = vld [vmem:[%s6337_s1 + $0x8] sm:$0xff]   ;;  %v4906_v54 = vld [vmem:[%s4819_s7 + $0x90] sm:$0xff]   ;;  %v4515_v2 = vld [vmem:[%s6337_s1 + $0x58] sm:$0xff]  }
  0x22   : > { %v4892_v48 = vld [vmem:[%s4819_s7 + $0x20] ss:$0 sps:$4 sm:$0x11]   ;;  %v561_v50 = vshll.u32 %v4889_v47, 16  ;;  %v4899_v52 = vld [vmem:[%s4819_s7 + $0x84] sm:$0xff]   ;;  %v4513_v58 = vld [vmem:[%s6337_s1 + $0x50] sm:$0xff]   ;;  %p4601_p3 = pnand %p4600_p2, %p4594_p13 }
  0x23   : > { %v552_v40 = vor.u32 %v551_v32, %v547_v26  ;;  %v4868_v41 = vsel %vm768_vm0, %v796_v34, %v797_v36  ;;  %v566_v51 = vshll.u32 %v4892_v48, 16  ;;  %v4903_v53 = vld [vmem:[%s4819_s7 + $0x8c] ss:$0 sps:$4 sm:$0x11]   ;;  %v802_v57 = vrot.slane %v4899_v52, 1  ;;  %v4514_v62 = vld [vmem:[%s6337_s1 + $0x10] sm:$0xff]  }
  0x24   : > { %3710 = vmatpush3.bf16.msra.mxu0 %v4484_v11  ;;  %4266 = vmatpush3.bf16.msra.mxu1 %v4770_v10  ;;  %v563_v55 = vrot.slane %v561_v50, 1  ;;  %v803_v59 = vrot.slane %v4903_v53, 1  ;;  %v4914_v60 = vld [vmem:[%s4819_s7 + $0x98] ss:$0 sps:$4 sm:$0x11]   ;;  %v805_v61 = vrot.slane %v4906_v54, 1 }
  0x25   : > { %3711 = vmatprep.subr.bf16.mxu0 %v4485_v12  ;;  %4259 = vmatprep.subr.bf16.mxu1 %v4784_v13  ;;  %v4875_v44 = vsel %vm533_vm1, %v552_v40, %v556_v33  ;;  %v568_v56 = vrot.slane %v566_v51, 1  ;;  %v4516_v5 = vld [vmem:[%s6337_s1 + $0x18] sm:$0xff]   ;;  %v4943_v6 = vld [vmem:[%s4819_s7 + $0x24] sm:$0xff]   ;;  %v4946_v8 = vld [vmem:[%s4819_s7 + $0x2c] ss:$0 sps:$4 sm:$0x11]  }
  0x26   : > { %4143 = vmatprep.mubr.bf16.mxu1 %v4868_v41  ;;  %1017 = vmatprep.mubr.bf16.mxu0 %v4875_v44  ;;  %v564_v63 = vor.u32 %v563_v55, %v559_v49  ;;  %v4923_v0 = vsel %vm768_vm0, %v802_v57, %v803_v59  ;;  %v571_v9 = vshrl.u32 %v4943_v6, 16  ;;  %v573_v11 = vshll.u32 %v4943_v6, 16  ;;  %v4968_v26 = vld [vmem:[%s4819_s7 + $0xb0] ss:$0 sps:$4 sm:$0x11]   ;;  %v4524_v28 = vld [vmem:[%s6337_s1 + $0x20] sm:$0xff]  }
  0x27   : > { %v578_v12 = vshll.u32 %v4946_v8, 16  ;;  %v812_v34 = vrot.slane %v4968_v26, 1  ;;  %v4526_v38 = vld [vmem:[%s6337_s1 + $0x28] sm:$0xff]   ;;  %v5000_v40 = vld [vmem:[%s4819_s7 + $0x38] ss:$0 sps:$4 sm:$0x11]  }
  0x28   : > { %3712 = vmatpush3.bf16.msra.mxu0 %v4487_v14  ;;  %4267 = vmatpush3.bf16.msra.mxu1 %v4784_v13  ;;  %v4930_v3 = vsel %vm533_vm1, %v564_v63, %v568_v56  ;;  %v4953_v14 = vld [vmem:[%s4819_s7 + $0x9c] sm:$0xff]   ;;  %v5007_v49 = vld [vmem:[%s4819_s7 + $0xb4] sm:$0xff]   ;;  %v5022_v59 = vld [vmem:[%s4819_s7 + $0xc8] ss:$0 sps:$4 sm:$0x11]  }
  0x29   : > { %3713 = vmatprep.subr.bf16.mxu0 %v4488_v15  ;;  %4260 = vmatprep.subr.bf16.mxu1 %v4798_v16  ;;  %v4957_v15 = vld [vmem:[%s4819_s7 + $0xa4] ss:$0 sps:$4 sm:$0x11]   ;;  %v5011_v50 = vld [vmem:[%s4819_s7 + $0xbc] ss:$0 sps:$4 sm:$0x11]  }
  0x2a   : > { %v5014_v51 = vld [vmem:[%s4819_s7 + $0xc0] sm:$0xff]   ;;  %v814_v57 = vrot.slane %v5007_v49, 1 }
  0x2c   : > { %3714 = vmatpush3.bf16.msra.mxu0 %v4490_v17  ;;  %4268 = vmatpush3.bf16.msra.mxu1 %v4798_v16  ;;  %v4960_v17 = vld [vmem:[%s4819_s7 + $0xa8] sm:$0xff]  }
  0x2d   : > { %3715 = vmatprep.subr.bf16.mxu0 %v4491_v18  ;;  %4261 = vmatprep.subr.bf16.mxu1 %v4811_v19  ;;  %v575_v18 = vrot.slane %v573_v11, 1  ;;  %v811_v27 = vrot.slane %v4960_v17, 1  ;;  %v4536_v11 = vld [vmem:[%s6337_s1 + $0x38] sm:$0xff]  }
  0x2f   : > { %v576_v32 = vor.u32 %v575_v18, %v571_v9  ;;  %v5054_v18 = vld [vmem:[%s4819_s7 + $0x44] ss:$0 sps:$4 sm:$0x11]  }
  0x30   : > { %3716 = vmatpush3.bf16.msra.mxu0 %v4493_v20  ;;  %4269 = vmatpush3.bf16.msra.mxu1 %v4811_v19  ;;  %v580_v20 = vrot.slane %v578_v12, 1  ;;  %v5051_v12 = vld [vmem:[%s4819_s7 + $0x3c] sm:$0xff]  }
  0x31   : > { %3717 = vmatprep.subr.bf16.mxu0 %v4494_v21  ;;  %4262 = vmatprep.subr.bf16.mxu1 %v4827_v22  ;;  %v808_v21 = vrot.slane %v4953_v14, 1 }
  0x32   : > { %v4984_v36 = vsel %vm533_vm1, %v576_v32, %v580_v20  ;;  %v595_v20 = vshrl.u32 %v5051_v12, 16 }
  0x34   : > { %3718 = vmatpush3.bf16.msra.mxu0 %v4496_v25  ;;  %4270 = vmatpush3.bf16.msra.mxu1 %v4827_v22  ;;  %v809_v25 = vrot.slane %v4957_v15, 1 }
  0x35   : > { %4111 = vmatprep.subr.bf16.mxu0 %v4732_v1  ;;  %3839 = vmatprep.subr.bf16.mxu1 %v4503_v35  ;;  %v4525_v35 = vld [vmem:[%s6337_s1 + $0x68] sm:$0xff]  }
  0x36   : > { %v4977_v33 = vsel %vm768_vm0, %v808_v21, %v809_v25  ;;  %v597_v21 = vshll.u32 %v5051_v12, 16  ;;  %v5061_v25 = vld [vmem:[%s4819_s7] sm:$0xff]  }
  0x37   : > { %1018 = vmatmul.mubr.bf16.vlgmr.msra.gmra.mrb[0].mxu0 %v4832_v23  ;;  %4144 = vmatmul.mubr.bf16.vlgmr.msra.gmra.mrb[0].mxu1 %v4881_v45 }
  0x38   : > { %4112 = vmatpush3.bf16.msra.mxu0 %v4732_v1  ;;  %3840 = vmatpush3.bf16.msra.mxu1 %v4504_v39  ;;  %v806_v1 = vrot.slane %v4914_v60, 1  ;;  %v4997_v39 = vld [vmem:[%s4819_s7 + $0x30] sm:$0xff]   ;;  %v599_v32 = vrot.slane %v597_v21, 1 }
  0x39   : > { %3841 = vmatprep.subr.bf16.mxu1 %v4505_v43  ;;  %4113 = vmatprep.subr.bf16.mxu0 %v4745_v4  ;;  %v583_v42 = vshrl.u32 %v4997_v39, 16  ;;  %v585_v43 = vshll.u32 %v4997_v39, 16 }
  0x3a   : > { %4147 = vmatprep.mubr.bf16.mxu1 %v4923_v0  ;;  %1025 = vmatprep.mubr.bf16.mxu0 %v4930_v3 }
  0x3b   : > { %v587_v55 = vrot.slane %v585_v43, 1  ;;  %v600_v43 = vor.u32 %v599_v32, %v595_v20  ;;  %v4546_v20 = vld [vmem:[%s6337_s1 + $0x88] sm:$0xff]  }
  0x3c   : > { %3842 = vmatpush3.bf16.msra.mxu1 %v4506_v46  ;;  %4114 = vmatpush3.bf16.msra.mxu0 %v4745_v4  ;;  %v4935_v4 = vsel %vm768_vm0, %v805_v61, %v806_v1  ;;  %v590_v46 = vshll.u32 %v5000_v40, 16  ;;  %v817_v61 = vrot.slane %v5014_v51, 1 }
  0x3d   : > { %3843 = vmatprep.subr.bf16.mxu1 %v4513_v58  ;;  %4115 = vmatprep.subr.bf16.mxu0 %v4757_v7  ;;  %v815_v58 = vrot.slane %v5011_v50, 1  ;;  %v588_v63 = vor.u32 %v587_v55, %v583_v42  ;;  %v5074_v42 = vld [vmem:[%s4819_s7 + $0x48] sm:$0xff]   ;;  %v5078_v55 = vld [vmem:[%s4819_s7 + $0x50] ss:$0 sps:$4 sm:$0x11]  }
  0x3e   : > { %v592_v56 = vrot.slane %v590_v46, 1 }
  0x3f   : > { %1026 = vmatmul.mubr.bf16.gmra.mrb[4].mxu0 %v4889_v47  ;;  %4148 = vmatmul.mubr.bf16.gmra.mrb[4].mxu1 %v4935_v4  ;;  %v5031_v1 = vsel %vm768_vm0, %v814_v57, %v815_v58  ;;  %v607_v57 = vshrl.u32 %v5074_v42, 16  ;;  %v5083_v58 = vld [vmem:[%s4819_s7 + $0x54] sm:$0xff]  }
  0x40   : > { %3844 = vmatpush3.bf16.msra.mxu1 %v4514_v62  ;;  %4116 = vmatpush3.bf16.msra.mxu0 %v4757_v7  ;;  %v4523_v7 = vld [vmem:[%s6337_s1 + $0x60] sm:$0xff]   ;;  %v4534_v62 = vld [vmem:[%s6337_s1 + $0x30] sm:$0xff]   ;;  %v5038_v9 = vsel %vm533_vm1, %v588_v63, %v592_v56  ;;  %v614_v63 = vshll.u32 %v5078_v55, 16 }
  0x41   : > { %3845 = vmatprep.subr.bf16.mxu1 %v4515_v2  ;;  %4117 = vmatprep.subr.bf16.mxu0 %v4770_v10  ;;  %v818_v2 = vrot.slane %v5022_v59, 1 }
  0x42   : > { %4151 = vmatprep.mubr.bf16.mxu1 %v4977_v33  ;;  %1033 = vmatprep.mubr.bf16.mxu0 %v4984_v36 }
  0x44   : > { %3846 = vmatpush3.bf16.msra.mxu1 %v4516_v5  ;;  %4118 = vmatpush3.bf16.msra.mxu0 %v4770_v10  ;;  %v4989_v10 = vsel %vm768_vm0, %v811_v27, %v812_v34  ;;  %v4535_v5 = vld [vmem:[%s6337_s1 + $0x78] sm:$0xff]   ;;  %v5065_v27 = vld [vmem:[%s4819_s7 + $0x8] ss:$0 sps:$4 sm:$0x11]   ;;  %v535_v34 = vshrl.u32 %v5061_v25, 16 }
  0x45   : > { %3847 = vmatprep.subr.bf16.mxu1 %v4523_v7  ;;  %4119 = vmatprep.subr.bf16.mxu0 %v4784_v13  ;;  %v602_v7 = vshll.u32 %v5054_v18, 16 }
  0x47   : > { %1034 = vmatmul.mubr.bf16.gmra.mrb[8].mxu0 %v4943_v6  ;;  %4152 = vmatmul.mubr.bf16.gmra.mrb[8].mxu1 %v4989_v10 }
  0x48   : > { %3848 = vmatpush3.bf16.msra.mxu1 %v4524_v28  ;;  %4120 = vmatpush3.bf16.msra.mxu0 %v4784_v13  ;;  %v4533_v13 = vld [vmem:[%s6337_s1 + $0x70] sm:$0xff]   ;;  %v4541_v28 = vld [vmem:[%s6337_s1 + $0x80] sm:$0xff]  }
  0x49   : > { %3849 = vmatprep.subr.bf16.mxu1 %v4525_v35  ;;  %4121 = vmatprep.subr.bf16.mxu0 %v4798_v16  ;;  %v537_v35 = vshll.u32 %v5061_v25, 16 }
  0x4a   : > { %4155 = vmatprep.mubr.bf16.mxu1 %v5031_v1  ;;  %1041 = vmatprep.mubr.bf16.mxu0 %v5038_v9 }
  0x4b   : > { %v539_v46 = vrot.slane %v537_v35, 1  ;;  %v5102_v35 = vld [vmem:[%s4819_s7 + $0x60] sm:$0xff]  }
  0x4c   : > { %3850 = vmatpush3.bf16.msra.mxu1 %v4526_v38  ;;  %4122 = vmatpush3.bf16.msra.mxu0 %v4798_v16  ;;  %v5043_v16 = vsel %vm768_vm0, %v817_v61, %v818_v2  ;;  %v542_v38 = vshll.u32 %v5065_v27, 16  ;;  %v5090_v2 = vld [vmem:[%s4819_s7 + $0x5c] ss:$0 sps:$4 sm:$0x11]  }
  0x4d   : > { %3851 = vmatprep.subr.bf16.mxu1 %v4533_v13  ;;  %4123 = vmatprep.subr.bf16.mxu0 %v4811_v19  ;;  %v609_v13 = vshll.u32 %v5074_v42, 16  ;;  %v626_v32 = vshll.u32 %v5090_v2, 16 }
  0x4e   : > { %v544_v56 = vrot.slane %v542_v38, 1 }
  0x4f   : > { %1042 = vmatmul.mubr.bf16.gmra.mrb[12].mxu0 %v4997_v39  ;;  %4156 = vmatmul.mubr.bf16.gmra.mrb[12].mxu1 %v5043_v16  ;;  %v628_v38 = vrot.slane %v626_v32, 1 }
  0x50   : > { %3852 = vmatpush3.bf16.msra.mxu1 %v4534_v62  ;;  %4124 = vmatpush3.bf16.msra.mxu0 %v4811_v19  ;;  %v604_v19 = vrot.slane %v602_v7, 1  ;;  %v540_v62 = vor.u32 %v539_v46, %v535_v34  ;;  %v616_v7 = vrot.slane %v614_v63, 1 }
  0x51   : > { %3853 = vmatprep.subr.bf16.mxu1 %v4535_v5  ;;  %4125 = vmatprep.subr.bf16.mxu0 %v4827_v22  ;;  %v619_v5 = vshrl.u32 %v5083_v58, 16 }
  0x52   : > { %v5086_v61 = vsel %vm533_vm1, %v600_v43, %v604_v19  ;;  %v545_v21 = vsel %vm533_vm1, %v540_v62, %v544_v56  ;;  %v5106_v43 = vld [vmem:[%s4819_s7 + $0x68] ss:$0 sps:$4 sm:$0x11]  }
  0x53   : > { %1049 = vmatprep.mubr.bf16.mxu0 %v5086_v61  ;;  %1483 = vmatprep.mubr.bf16.mxu1 %v545_v21 }
  0x54   : > { %3854 = vmatpush3.bf16.msra.mxu1 %v4536_v11  ;;  %4126 = vmatpush3.bf16.msra.mxu0 %v4827_v22  ;;  %v611_v22 = vrot.slane %v609_v13, 1  ;;  %v621_v11 = vshll.u32 %v5083_v58, 16  ;;  %v633_v13 = vshll.u32 %v5102_v35, 16 }
  0x55   : > { %4159 = vmatprep.subr.bf16.mxu1 %v4541_v28 }
  0x56   : > { %v612_v19 = vor.u32 %v611_v22, %v607_v57  ;;  %v623_v34 = vrot.slane %v621_v11, 1  ;;  %v4549_v57 = vld [vmem:[%s6337_s1 + $0x90] sm:$0xff]   ;;  %v635_v63 = vrot.slane %v633_v13, 1  ;;  %v638_v22 = vshll.u32 %v5106_v43, 16 }
  0x57   : > { %1050 = vmatmul.mubr.bf16.gmra.mrb[16].mxu0 %v5051_v12  ;;  %1484 = vmatmul.mubr.bf16.vlgmr.msra.gmra.mrb[16].mxu1 %v5061_v25  ;;  %v772_v13 = vrot.slane %v4832_v23, 1 }
  0x58   : > { %4160 = vmatpush3.bf16.msra.mxu1 %v4541_v28  ;;  %v5109_v46 = vsel %vm533_vm1, %v612_v19, %v616_v7  ;;  %1491 = vmatprep.mubr.bf16.mxu1 %v4875_v44  ;;  %v624_v56 = vor.u32 %v623_v34, %v619_v5  ;;  %v631_v28 = vshrl.u32 %v5102_v35, 16  ;;  %v4550_v44 = vld [vmem:[%s6337_s1 + $0x98] sm:$0xff]   ;;  %v4553_v5 = vld [vmem:[%s6337_s1 + $0x1c0] sm:$0xff]   ;;  %v640_v21 = vrot.slane %v638_v22, 1 }
  0x59   : > { %1057 = vmatprep.mubr.bf16.mxu0 %v5109_v46  ;;  %4161 = vmatprep.subr.bf16.mxu1 %v4546_v20  ;;  %v645_v7 = vshll.u32 %v4844_v29, 16  ;;  %v643_v19 = vshrl.u32 %v4844_v29, 16 }
  0x5a   : > { %v5118_v62 = vsel %vm533_vm1, %v624_v56, %v628_v38  ;;  %v636_v11 = vor.u32 %v635_v63, %v631_v28  ;;  %3975 = vmatprep.subr.bf16.mxu0 %v4553_v5  ;;  %v650_v38 = vshll.u32 %v4848_v30, 16  ;;  %v4552_v56 = vld [vmem:[%s6337_s1 + $0xa8] sm:$0xff]   ;;  %v657_v30 = vshll.u32 %v4851_v31, 16 }
  0x5b   : > { %v647_v34 = vrot.slane %v645_v7, 1 }
  0x5c   : > { %4162 = vmatpush3.bf16.msra.mxu1 %v4546_v20  ;;  %v4551_v20 = vld [vmem:[%s6337_s1 + $0xa0] sm:$0xff]   ;;  %v5137_v32 = vsel %vm533_vm1, %v636_v11, %v640_v21  ;;  %v652_v63 = vrot.slane %v650_v38, 1  ;;  %v659_v5 = vrot.slane %v657_v30, 1  ;;  %v662_v11 = vshll.u32 %v4860_v37, 16  ;;  %v4564_v21 = vld [vmem:[%s6337_s1 + $0xb8] sm:$0xff]  }
  0x5d   : > { %4163 = vmatprep.subr.bf16.mxu1 %v4549_v57  ;;  %v648_v28 = vor.u32 %v647_v34, %v643_v19  ;;  %v669_v19 = vshll.u32 %v4899_v52, 16  ;;  %v769_v37 = vrot.slane %v5061_v25, 1  ;;  %v770_v34 = vrot.slane %v5065_v27, 1  ;;  %v5185_v25 = vld [vmem:[%s6337_s1 + $0x200] sm:$0xff]  }
  0x5e   : > { %v667_v38 = vshrl.u32 %v4899_v52, 16 }
  0x5f   : > { %1058 = vmatmul.mubr.bf16.gmra.mrb[20].mxu0 %v5074_v42  ;;  %1492 = vmatmul.mubr.bf16.gmra.mrb[20].mxu1 %v4832_v23  ;;  %v4555_v23 = vld [vmem:[%s6337_s1 + $0xb0] sm:$0xff]  }
  0x60   : > { %1065 = vmatprep.mubr.bf16.mxu0 %v5118_v62  ;;  %1499 = vmatprep.mubr.bf16.mxu1 %v4930_v3 }
  0x61   : > { %4164 = vmatpush3.bf16.msra.mxu1 %v4549_v57  ;;  %v773_v57 = vrot.slane %v4835_v24, 1  ;;  %v655_v24 = vshrl.u32 %v4851_v31, 16 }
  0x62   : > { %4165 = vmatprep.subr.bf16.mxu1 %v4550_v44 }
  0x63   : > { %v5151_v22 = vsel %vm768_vm0, %v772_v13, %v773_v57  ;;  %v660_v7 = vor.u32 %v659_v5, %v655_v24  ;;  %v671_v13 = vrot.slane %v669_v19, 1  ;;  %v674_v57 = vshll.u32 %v4903_v53, 16 }
  0x64   : > { %v679_v53 = vshrl.u32 %v4906_v54, 16  ;;  %v686_v24 = vshll.u32 %v4914_v60, 16  ;;  %v691_v60 = vshrl.u32 %v4953_v14, 16 }
  0x65   : > { %4166 = vmatpush3.bf16.msra.mxu1 %v4550_v44  ;;  %v5159_v44 = vsel %vm533_vm1, %v648_v28, %v652_v63  ;;  %v5178_v28 = vsel %vm768_vm0, %v769_v37, %v770_v34  ;;  %v681_v63 = vshll.u32 %v4906_v54, 16  ;;  %v672_v27 = vor.u32 %v671_v13, %v667_v38 }
  0x66   : > { %4167 = vmatprep.subr.bf16.mxu1 %v4551_v20  ;;  %v676_v30 = vrot.slane %v674_v57, 1  ;;  %v698_v37 = vshll.u32 %v4957_v15, 16  ;;  %v705_v13 = vshll.u32 %v4960_v17, 16  ;;  %v710_v15 = vshll.u32 %v4968_v26, 16 }
  0x67   : > { %1066 = vmatmul.mubr.bf16.gmra.mrb[24].mxu0 %v5083_v58  ;;  %1500 = vmatmul.mubr.bf16.gmra.mrb[24].mxu1 %v4889_v47  ;;  %v722_v26 = vshll.u32 %v5011_v50, 16  ;;  %v734_v50 = vshll.u32 %v5022_v59, 16  ;;  %v776_v59 = vrot.slane %v4892_v48, 1 }
  0x68   : > { %1073 = vmatprep.mubr.bf16.mxu0 %v5137_v32  ;;  %1507 = vmatprep.mubr.bf16.mxu1 %v4984_v36  ;;  %v5194_v5 = vsel %vm533_vm1, %v672_v27, %v676_v30  ;;  %v700_v38 = vrot.slane %v698_v37, 1  ;;  %v707_v27 = vrot.slane %v705_v13, 1 }
  0x69   : > { %4168 = vmatpush3.bf16.msra.mxu1 %v4551_v20  ;;  %v664_v20 = vrot.slane %v662_v11, 1 }
  0x6a   : > { %4169 = vmatprep.subr.bf16.mxu1 %v4552_v56 }
  0x6d   : > { %4170 = vmatpush3.bf16.msra.mxu1 %v4552_v56  ;;  %v5174_v56 = vsel %vm533_vm1, %v660_v7, %v664_v20  ;;  %v693_v7 = vshll.u32 %v4953_v14, 16 }
  0x6e   : > { %4171 = vmatprep.subr.bf16.mxu1 %v4555_v23 }
  0x6f   : > { %1074 = vmatmul.mubr.bf16.gmra.mrb[28].mxu0 %v5102_v35  ;;  %1508 = vmatmul.mubr.bf16.gmra.mrb[28].mxu1 %v4943_v6  ;;  %v695_v19 = vrot.slane %v693_v7, 1 }
  0x70   : > { %1081 = vmatprep.mubr.bf16.mxu0 %v5159_v44  ;;  %1515 = vmatprep.mubr.bf16.mxu1 %v5038_v9 }
  0x71   : > { %4172 = vmatpush3.bf16.msra.mxu1 %v4555_v23  ;;  %v683_v23 = vrot.slane %v681_v63, 1  ;;  %v696_v34 = vor.u32 %v695_v19, %v691_v60  ;;  %v703_v63 = vshrl.u32 %v4960_v17, 16  ;;  %v724_v60 = vrot.slane %v722_v26, 1 }
  0x72   : > { %4173 = vmatprep.subr.bf16.mxu1 %v4564_v21  ;;  %v729_v19 = vshll.u32 %v5014_v51, 16  ;;  %v785_v26 = vrot.slane %v5054_v18, 1  ;;  %v4561_v18 = vld [vmem:[%s6337_s1 + $0x198] sm:$0xff]  }
  0x73   : > { %v684_v11 = vor.u32 %v683_v23, %v679_v53  ;;  %v5212_v57 = vsel %vm533_vm1, %v696_v34, %v700_v38  ;;  %v708_v30 = vor.u32 %v707_v27, %v703_v63  ;;  %v712_v53 = vrot.slane %v710_v15, 1 }
  0x74   : > { %v717_v23 = vshll.u32 %v5007_v49, 16  ;;  %v727_v34 = vshrl.u32 %v5014_v51, 16  ;;  %v731_v38 = vrot.slane %v729_v19, 1  ;;  %v736_v63 = vrot.slane %v734_v50, 1 }
  0x75   : > { %4174 = vmatpush3.bf16.msra.mxu1 %v4564_v21  ;;  %v688_v21 = vrot.slane %v686_v24, 1  ;;  %v5222_v24 = vsel %vm533_vm1, %v708_v30, %v712_v53  ;;  %v778_v15 = vrot.slane %v4943_v6, 1  ;;  %v779_v30 = vrot.slane %v4946_v8, 1  ;;  %v4556_v53 = vld [vmem:[%s6337_s1 + $0x1c8] sm:$0xff]  }
  0x76   : > { %4207 = vmatprep.subr.bf16.mxu1 %v5185_v25  ;;  %v732_v13 = vor.u32 %v731_v38, %v727_v34  ;;  %v781_v8 = vrot.slane %v4997_v39, 1  ;;  %v787_v19 = vrot.slane %v5074_v42, 1  ;;  %v788_v34 = vrot.slane %v5078_v55, 1  ;;  %v4562_v38 = vld [vmem:[%s6337_s1 + $0x1e0] sm:$0xff]  }
  0x77   : > { %1082 = vmatmul.mubr.bf16.gmra.mrb[32].mxu0 %v4844_v29  ;;  %1516 = vmatmul.mubr.bf16.gmra.mrb[32].mxu1 %v4997_v39  ;;  %v5202_v20 = vsel %vm533_vm1, %v684_v11, %v688_v21  ;;  %v715_v11 = vshrl.u32 %v5007_v49, 16  ;;  %v719_v21 = vrot.slane %v717_v23, 1  ;;  %v5265_v48 = vsel %vm768_vm0, %v778_v15, %v779_v30  ;;  %v4563_v55 = vld [vmem:[%s6337_s1 + $0x1a0] sm:$0xff]   ;;  %v4567_v30 = vld [vmem:[%s6337_s1 + $0x1f0] sm:$0xff]  }
  0x78   : > { %1089 = vmatprep.mubr.bf16.mxu0 %v5174_v56  ;;  %1523 = vmatprep.mubr.bf16.mxu1 %v5086_v61  ;;  %v5241_v27 = vsel %vm533_vm1, %v732_v13, %v736_v63  ;;  %v782_v23 = vrot.slane %v5000_v40, 1  ;;  %v4559_v40 = vld [vmem:[%s6337_s1 + $0x190] sm:$0xff]   ;;  %v790_v50 = vrot.slane %v5083_v58, 1  ;;  %v791_v13 = vrot.slane %v5090_v2, 1  ;;  %v4566_v2 = vld [vmem:[%s6337_s1 + $0x1a8] sm:$0xff]  }
  0x79   : > { %v720_v7 = vor.u32 %v719_v21, %v715_v11  ;;  %v4558_v11 = vld [vmem:[%s6337_s1 + $0x1d0] sm:$0xff]   ;;  %v784_v21 = vrot.slane %v5051_v12, 1  ;;  %v5308_v63 = vsel %vm768_vm0, %v787_v19, %v788_v34  ;;  %v794_v15 = vrot.slane %v5106_v43, 1  ;;  %v4570_v43 = vld [vmem:[%s6337_s1 + $0x1b8] sm:$0xff]  }
  0x7b   : > { %v5232_v37 = vsel %vm533_vm1, %v720_v7, %v724_v60  ;;  %v5282_v7 = vsel %vm768_vm0, %v781_v8, %v782_v23  ;;  %v5291_v60 = vsel %vm768_vm0, %v784_v21, %v785_v26 }
  0x7f   : > { %1090 = vmatmul.mubr.bf16.gmra.mrb[36].mxu0 %v4851_v31  ;;  %1524 = vmatmul.mubr.bf16.gmra.mrb[36].mxu1 %v5051_v12 }
  0x80   : > { %1097 = vmatprep.mubr.bf16.mxu0 %v5194_v5  ;;  %1531 = vmatprep.mubr.bf16.mxu1 %v5109_v46 }
  0x87   : > { %1098 = vmatmul.mubr.bf16.gmra.mrb[40].mxu0 %v4899_v52  ;;  %1532 = vmatmul.mubr.bf16.gmra.mrb[40].mxu1 %v5074_v42 }
  0x88   : > { %1105 = vmatprep.mubr.bf16.mxu0 %v5202_v20  ;;  %1539 = vmatprep.mubr.bf16.mxu1 %v5118_v62 }
  0x8f   : > { %1106 = vmatmul.mubr.bf16.gmra.mrb[44].mxu0 %v4906_v54  ;;  %1540 = vmatmul.mubr.bf16.gmra.mrb[44].mxu1 %v5083_v58 }
  0x90   : > { %1113 = vmatprep.mubr.bf16.mxu0 %v5212_v57  ;;  %1547 = vmatprep.mubr.bf16.mxu1 %v5137_v32 }
  0x97   : > { %1114 = vmatmul.mubr.bf16.gmra.mrb[48].mxu0 %v4953_v14  ;;  %1548 = vmatmul.mubr.bf16.gmra.mrb[48].mxu1 %v5102_v35 }
  0x98   : > { %1121 = vmatprep.mubr.bf16.mxu0 %v5222_v24  ;;  %1555 = vmatprep.mubr.bf16.mxu1 %v5159_v44 }
  0x9f   : > { %1122 = vmatmul.mubr.bf16.gmra.mrb[52].mxu0 %v4960_v17  ;;  %1556 = vmatmul.mubr.bf16.gmra.mrb[52].mxu1 %v4844_v29  ;;  %v775_v29 = vrot.slane %v4889_v47, 1 }
  0xa0   : > { %1129 = vmatprep.mubr.bf16.mxu0 %v5232_v37  ;;  %1563 = vmatprep.mubr.bf16.mxu1 %v5174_v56 }
  0xa7   : > { %1130 = vmatmul.mubr.bf16.gmra.mrb[56].mxu0 %v5007_v49  ;;  %1564 = vmatmul.mubr.bf16.gmra.mrb[56].mxu1 %v4851_v31  ;;  %v5256_v31 = vsel %vm768_vm0, %v775_v29, %v776_v59  ;;  %v5317_v29 = vsel %vm768_vm0, %v790_v50, %v791_v13  ;;  %v793_v59 = vrot.slane %v5102_v35, 1 }
  0xa8   : > { %1137 = vmatprep.mubr.bf16.mxu0 %v5241_v27  ;;  %1571 = vmatprep.mubr.bf16.mxu1 %v5194_v5 }
  0xaf   : > { %1138 = vmatmul.mubr.bf16.gmra.mrb[60].mxu0 %v5014_v51  ;;  %1572 = vmatmul.mubr.bf16.gmra.mrb[60].mxu1 %v4899_v52  ;;  %v4554_v51 = vld [vmem:[%s6337_s1 + $0x180] sm:$0xff]   ;;  %v4557_v52 = vld [vmem:[%s6337_s1 + $0x188] sm:$0xff]  }
  0xb0   : > { %4127 = vmatprep.mubr.bf16.mxu0 %v5151_v22  ;;  %1579 = vmatprep.mubr.bf16.mxu1 %v5202_v20 }
  0xb7   : > { %4128 = vmatmul.mubr.bf16.vlgmr.msra.gmra.mrb[64].mxu0 %v5256_v31  ;;  %1580 = vmatmul.mubr.bf16.gmra.mrb[64].mxu1 %v4906_v54  ;;  %v4560_v54 = vld [vmem:[%s6337_s1 + $0x1d8] sm:$0xff]  }
  0xb8   : > { %3976 = vmatpush3.bf16.msra.mxu0 %v4554_v51  ;;  %4131 = vmatprep.mubr.bf16.mxu0 %v5265_v48  ;;  %v5332_v51 = vsel %vm768_vm0, %v793_v59, %v794_v15 }
  0xb9   : > { %3977 = vmatprep.subr.bf16.mxu0 %v4556_v53  ;;  %1587 = vmatprep.mubr.bf16.mxu1 %v5212_v57  ;;  %v4568_v53 = vld [vmem:[%s6337_s1 + $0x1b0] sm:$0xff]  }
  0xbc   : > { %3978 = vmatpush3.bf16.msra.mxu0 %v4557_v52  ;;  %v4572_v52 = vld [vmem:[%s6337_s1 + $0x208] sm:$0xff]  }
  0xbd   : > { %3979 = vmatprep.subr.bf16.mxu0 %v4558_v11 }
  0xbf   : > { %4132 = vmatmul.mubr.bf16.gmra.mrb[68].mxu0 %v5282_v7  ;;  %1588 = vmatmul.mubr.bf16.gmra.mrb[68].mxu1 %v4953_v14  ;;  %v4565_v14 = vld [vmem:[%s6337_s1 + $0x1e8] sm:$0xff]  }
  0xc0   : > { %3980 = vmatpush3.bf16.msra.mxu0 %v4559_v40  ;;  %4135 = vmatprep.mubr.bf16.mxu0 %v5291_v60 }
  0xc1   : > { %3981 = vmatprep.subr.bf16.mxu0 %v4560_v54  ;;  %1595 = vmatprep.mubr.bf16.mxu1 %v5222_v24 }
  0xc4   : > { %3982 = vmatpush3.bf16.msra.mxu0 %v4561_v18 }
  0xc5   : > { %3983 = vmatprep.subr.bf16.mxu0 %v4562_v38  ;;  %v4584_v38 = vld [vmem:[%s4819_s7 + $0x90] sm:$0xff]  }
  0xc7   : > { %4136 = vmatmul.mubr.bf16.gmra.mrb[72].mxu0 %v5308_v63  ;;  %1596 = vmatmul.mubr.bf16.gmra.mrb[72].mxu1 %v4960_v17  ;;  %v4569_v17 = vld [vmem:[%s6337_s1 + $0x1f8] sm:$0xff]  }
  0xc8   : > { %3984 = vmatpush3.bf16.msra.mxu0 %v4563_v55  ;;  %4139 = vmatprep.mubr.bf16.mxu0 %v5317_v29 }
  0xc9   : > { %3985 = vmatprep.subr.bf16.mxu0 %v4565_v14  ;;  %1603 = vmatprep.mubr.bf16.mxu1 %v5232_v37 }
  0xcc   : > { %3986 = vmatpush3.bf16.msra.mxu0 %v4566_v2 }
  0xcd   : > { %3987 = vmatprep.subr.bf16.mxu0 %v4567_v30 }
  0xcf   : > { %4140 = vmatmul.mubr.bf16.gmra.mrb[76].mxu0 %v5332_v51  ;;  %1604 = vmatmul.mubr.bf16.gmra.mrb[76].mxu1 %v5007_v49  ;;  %v4577_v49 = vld [vmem:[%s6337_s1 + $0x230] sm:$0xff]  }
  0xd0   : > { %3988 = vmatpush3.bf16.msra.mxu0 %v4568_v53  ;;  %1949 = vmatprep.mubr.bf16.mxu0 %v4930_v3  ;;  %v4573_v3 = vld [vmem:[%s6337_s1 + $0x210] sm:$0xff]  }
  0xd1   : > { %3989 = vmatprep.subr.bf16.mxu0 %v4569_v17  ;;  %4175 = vmatprep.mubr.bf16.mxu1 %v5178_v28 }
  0xd4   : > { %3990 = vmatpush3.bf16.msra.mxu0 %v4570_v43 }
  0xd7   : > { %1950 = vmatmul.mubr.bf16.vlgmr.msra.gmra.mrb[80].mxu0 %v4889_v47  ;;  %4176 = vmatmul.mubr.bf16.vlgmr.msra.gmra.mrb[80].mxu1 %v5151_v22  ;;  %v4574_v47 = vld [vmem:[%s6337_s1 + $0x218] sm:$0xff]  }
  0xd8   : > { %1957 = vmatprep.mubr.bf16.mxu0 %v4984_v36  ;;  %4208 = vmatpush3.bf16.msra.mxu1 %v5185_v25  ;;  %v4575_v36 = vld [vmem:[%s6337_s1 + $0x220] sm:$0xff]   ;;  %v4581_v25 = vld [vmem:[%s4819_s7 + $0x6c] sm:$0xff]  }
  0xd9   : > { %4179 = vmatprep.mubr.bf16.mxu1 %v5256_v31  ;;  %4209 = vmatprep.subr.bf16.mxu1 %v4572_v52 }
  0xdc   : > { %4210 = vmatpush3.bf16.msra.mxu1 %v4572_v52 }
  0xdd   : > { %4211 = vmatprep.subr.bf16.mxu1 %v4573_v3 }
  0xdf   : > { %1958 = vmatmul.mubr.bf16.gmra.mrb[84].mxu0 %v4943_v6  ;;  %4180 = vmatmul.mubr.bf16.gmra.mrb[84].mxu1 %v5265_v48  ;;  %v4576_v6 = vld [vmem:[%s6337_s1 + $0x228] sm:$0xff]  }
  0xe0   : > { %1965 = vmatprep.mubr.bf16.mxu0 %v5038_v9  ;;  %4183 = vmatprep.mubr.bf16.mxu1 %v5282_v7 }
  0xe1   : > { %4212 = vmatpush3.bf16.msra.mxu1 %v4573_v3 }
  0xe2   : > { %4213 = vmatprep.subr.bf16.mxu1 %v4574_v47 }
  0xe5   : > { %4214 = vmatpush3.bf16.msra.mxu1 %v4574_v47  ;;  %v5444_v47 = vld [vmem:[%s4819_s7 + $0xcc] sm:$0xff]  }
  0xe6   : > { %4215 = vmatprep.subr.bf16.mxu1 %v4575_v36 }
  0xe7   : > { %1966 = vmatmul.mubr.bf16.gmra.mrb[88].mxu0 %v4997_v39  ;;  %4184 = vmatmul.mubr.bf16.gmra.mrb[88].mxu1 %v5291_v60  ;;  %v4578_v39 = vld [vmem:[%s6337_s1 + $0x238] sm:$0xff]  }
  0xe8   : > { %1973 = vmatprep.mubr.bf16.mxu0 %v5086_v61  ;;  %4187 = vmatprep.mubr.bf16.mxu1 %v5308_v63 }
  0xe9   : > { %4216 = vmatpush3.bf16.msra.mxu1 %v4575_v36 }
  0xea   : > { %4217 = vmatprep.subr.bf16.mxu1 %v4576_v6 }
  0xed   : > { %4218 = vmatpush3.bf16.msra.mxu1 %v4576_v6 }
  0xee   : > { %4219 = vmatprep.subr.bf16.mxu1 %v4577_v49 }
  0xef   : > { %1974 = vmatmul.mubr.bf16.gmra.mrb[92].mxu0 %v5051_v12  ;;  %4188 = vmatmul.mubr.bf16.gmra.mrb[92].mxu1 %v5317_v29 }
  0xf0   : > { %1981 = vmatprep.mubr.bf16.mxu0 %v5109_v46  ;;  %4191 = vmatprep.mubr.bf16.mxu1 %v5332_v51 }
  0xf1   : > { %4220 = vmatpush3.bf16.msra.mxu1 %v4577_v49 }
  0xf2   : > { %4221 = vmatprep.subr.bf16.mxu1 %v4578_v39 }
  0xf5   : > { %4222 = vmatpush3.bf16.msra.mxu1 %v4578_v39 }
  0xf7   : > { %1982 = vmatmul.mubr.bf16.gmra.mrb[96].mxu0 %v5074_v42  ;;  %4192 = vmatmul.mubr.bf16.gmra.mrb[0].mxu1 %v4868_v41 }
  0xf8   : > { %1989 = vmatprep.mubr.bf16.mxu0 %v5118_v62  ;;  %4195 = vmatprep.mubr.bf16.mxu1 %v4881_v45 }
  0xff   : > { %1990 = vmatmul.mubr.bf16.gmra.mrb[100].mxu0 %v5083_v58  ;;  %4196 = vmatmul.mubr.bf16.gmra.mrb[4].mxu1 %v4923_v0 }
 0x100   : > { %1997 = vmatprep.mubr.bf16.mxu0 %v5137_v32  ;;  %4199 = vmatprep.mubr.bf16.mxu1 %v4935_v4 }
 0x107   : > { %1998 = vmatmul.mubr.bf16.gmra.mrb[104].mxu0 %v5102_v35  ;;  %4200 = vmatmul.mubr.bf16.gmra.mrb[8].mxu1 %v4977_v33 }
 0x108   : > { %2005 = vmatprep.mubr.bf16.mxu0 %v5159_v44  ;;  %4203 = vmatprep.mubr.bf16.mxu1 %v4989_v10  ;;  %v4582_v44 = vld [vmem:[%s4819_s7 + $0x78] sm:$0xff]  }
 0x10a   : > { %v3719_v9 = vpop.f32.mrb[0].mxu0 }
 0x10b   : > { %v3720_v12 = vpop.f32.mrb[1].mxu0 }
 0x10c   : > { %v5393_v61 = vadd.f32 %v3720_v12, %v3719_v9  ;;  %v3722_v42 = vpop.f32.mrb[2].mxu0  ;;  %v741_v9 = vshll.u32 %v5444_v47, 16 }
 0x10d   : > { %v3723_v46 = vpop.f32.mrb[3].mxu0 }
 0x10e   : > { %v5395_v62 = vadd.f32 %v3723_v46, %v3722_v42 }
 0x10f   : > { %2006 = vmatmul.mubr.bf16.gmra.mrb[108].mxu0 %v4581_v25  ;;  %4204 = vmatmul.mubr.bf16.gmra.mrb[12].mxu1 %v5031_v1 }
 0x110   : > { %2013 = vmatprep.mubr.bf16.mxu0 %v5174_v56  ;;  %4223 = vmatprep.mubr.bf16.mxu1 %v5256_v31  ;;  %v4583_v56 = vld [vmem:[%s4819_s7 + $0x84] sm:$0xff]  }
 0x112   : > { %v3725_v58 = vpop.f32.mrb[4].mxu0 }
 0x113   : > { %v3726_v32 = vpop.f32.mrb[5].mxu0 }
 0x114   : > { %v5401_v22 = vadd.f32 %v3726_v32, %v3725_v58  ;;  %v3728_v28 = vpop.f32.mrb[6].mxu0 }
 0x115   : > { %v3729_v8 = vpop.f32.mrb[7].mxu0 }
 0x116   : > { %v5404_v23 = vadd.f32 %v3729_v8, %v3728_v28  ;;  %v739_v8 = vshrl.u32 %v5444_v47, 16 }
 0x117   : > { %2014 = vmatmul.mubr.bf16.gmra.mrb[112].mxu0 %v4582_v44  ;;  %4224 = vmatmul.mubr.bf16.vlgmr.msra.gmra.mrb[80].mxu1 %v5265_v48 }
 0x118   : > { %2021 = vmatprep.mubr.bf16.mxu0 %v5194_v5  ;;  %4227 = vmatprep.mubr.bf16.mxu1 %v5282_v7 }
 0x11a   : > { %v3731_v35 = vpop.f32.mrb[8].mxu0 }
 0x11b   : > { %v3732_v11 = vpop.f32.mrb[9].mxu0 }
 0x11c   : > { %v5410_v21 = vadd.f32 %v3732_v11, %v3731_v35  ;;  %v3734_v26 = vpop.f32.mrb[10].mxu0  ;;  %v743_v35 = vrot.slane %v741_v9, 1 }
 0x11d   : > { %v3735_v40 = vpop.f32.mrb[11].mxu0 }
 0x11e   : > { %v5414_v54 = vadd.f32 %v3735_v40, %v3734_v26  ;;  %v4587_v40 = vld [vmem:[%s4819_s7 + $0xb4] sm:$0xff]  }
 0x11f   : > { %2022 = vmatmul.mubr.bf16.gmra.mrb[116].mxu0 %v4583_v56  ;;  %4228 = vmatmul.mubr.bf16.gmra.mrb[84].mxu1 %v5291_v60  ;;  %v744_v56 = vor.u32 %v743_v35, %v739_v8 }
 0x120   : > { %2029 = vmatprep.mubr.bf16.mxu0 %v5202_v20  ;;  %4231 = vmatprep.mubr.bf16.mxu1 %v5308_v63 }
 0x122   : > { %v3737_v31 = vpop.f32.mrb[12].mxu0 }
 0x123   : > { %v3738_v18 = vpop.f32.mrb[13].mxu0 }
 0x124   : > { %v5420_v19 = vadd.f32 %v3738_v18, %v3737_v31  ;;  %v3740_v34 = vpop.f32.mrb[14].mxu0 }
 0x125   : > { %v3741_v5 = vpop.f32.mrb[15].mxu0 }
 0x126   : > { %v5423_v48 = vadd.f32 %v3741_v5, %v3740_v34 }
 0x127   : > { %2030 = vmatmul.mubr.bf16.gmra.mrb[120].mxu0 %v4584_v38  ;;  %4232 = vmatmul.mubr.bf16.gmra.mrb[88].mxu1 %v5317_v29 }
 0x128   : > { %2037 = vmatprep.mubr.bf16.mxu0 %v5212_v57  ;;  %4235 = vmatprep.mubr.bf16.mxu1 %v5332_v51  ;;  %v4585_v57 = vld [vmem:[%s4819_s7 + $0x9c] sm:$0xff]  }
 0x12a   : > { %v3743_v7 = vpop.f32.mrb[16].mxu0  ;;  %v3855_v13 = vpop.f32.mrb[16].mxu1 }
 0x12b   : > { %v3744_v20 = vpop.f32.mrb[17].mxu0  ;;  %v3856_v63 = vpop.f32.mrb[17].mxu1 }
 0x12c   : > { %v5429_v60 = vadd.f32 %v3744_v20, %v3743_v7  ;;  %v3746_v50 = vpop.f32.mrb[18].mxu0  ;;  %v5433_v2 = vadd.f32 %v3856_v63, %v3855_v13  ;;  %v3858_v59 = vpop.f32.mrb[18].mxu1 }
 0x12d   : > { %v3747_v55 = vpop.f32.mrb[19].mxu0  ;;  %v3859_v15 = vpop.f32.mrb[19].mxu1 }
 0x12e   : > { %v5431_v14 = vadd.f32 %v3747_v55, %v3746_v50  ;;  %v5436_v29 = vadd.f32 %v3859_v15, %v3858_v59  ;;  %v4588_v59 = vld [vmem:[%s4819_s7 + $0xc0] sm:$0xff]  }
 0x12f   : > { %2038 = vmatmul.mubr.bf16.gmra.mrb[124].mxu0 %v4585_v57  ;;  %4236 = vmatmul.mubr.bf16.gmra.mrb[92].mxu1 %v4868_v41  ;;  %v4586_v41 = vld [vmem:[%s4819_s7 + $0xa8] sm:$0xff]   ;;  %v820_v57 = vrot.slane %v5444_v47, 1 }
 0x130   : > { %2045 = vmatprep.mubr.bf16.mxu0 %v5222_v24  ;;  %4239 = vmatprep.mubr.bf16.mxu1 %v4881_v45  ;;  %v4580_v45 = vld [vmem:[%s4819_s7 + $0xd4] ss:$0 sps:$4 sm:$0x11]  }
 0x132   : > { %v3749_v30 = vpop.f32.mrb[20].mxu0  ;;  %v3861_v43 = vpop.f32.mrb[20].mxu1 }
 0x133   : > { %v3750_v51 = vpop.f32.mrb[21].mxu0  ;;  %v3862_v3 = vpop.f32.mrb[21].mxu1 }
 0x134   : > { %v5441_v53 = vadd.f32 %v3750_v51, %v3749_v30  ;;  %v3752_v17 = vpop.f32.mrb[22].mxu0  ;;  %v5448_v6 = vadd.f32 %v3862_v3, %v3861_v43  ;;  %v3864_v24 = vpop.f32.mrb[22].mxu1  ;;  %v821_v30 = vrot.slane %v4580_v45, 1 }
 0x135   : > { %v3753_v52 = vpop.f32.mrb[23].mxu0  ;;  %v3865_v49 = vpop.f32.mrb[23].mxu1 }
 0x136   : > { %v5446_v36 = vadd.f32 %v3753_v52, %v3752_v17  ;;  %v5451_v39 = vadd.f32 %v3865_v49, %v3864_v24 }
 0x137   : > { %2046 = vmatmul.mubr.bf16.gmra.mrb[128].mxu0 %v4586_v41  ;;  %4240 = vmatmul.mubr.bf16.gmra.mrb[0].mxu1 %v4923_v0 }
 0x138   : > { %2053 = vmatprep.mubr.bf16.mxu0 %v5232_v37  ;;  %4243 = vmatprep.mubr.bf16.mxu1 %v4935_v4  ;;  %v746_v37 = vshll.u32 %v4580_v45, 16 }
 0x13a   : > { %v3755_v12 = vpop.f32.mrb[24].mxu0  ;;  %v3867_v32 = vpop.f32.mrb[24].mxu1  ;;  %v748_v31 = vrot.slane %v746_v37, 1 }
 0x13b   : > { %v3756_v42 = vpop.f32.mrb[25].mxu0  ;;  %v3868_v25 = vpop.f32.mrb[25].mxu1 }
 0x13c   : > { %v5458_v46 = vadd.f32 %v3756_v42, %v3755_v12  ;;  %v3758_v58 = vpop.f32.mrb[26].mxu0  ;;  %v5463_v0 = vadd.f32 %v3868_v25, %v3867_v32  ;;  %v3870_v11 = vpop.f32.mrb[26].mxu1  ;;  %v749_v13 = vsel %vm533_vm1, %v744_v56, %v748_v31  ;;  %v822_v12 = vsel %vm768_vm0, %v820_v57, %v821_v30 }
 0x13d   : > { %v3759_v28 = vpop.f32.mrb[27].mxu0  ;;  %v3871_v26 = vpop.f32.mrb[27].mxu1 }
 0x13e   : > { %v5461_v44 = vadd.f32 %v3759_v28, %v3758_v58  ;;  %v5466_v4 = vadd.f32 %v3871_v26, %v3870_v11 }
 0x13f   : > { %2054 = vmatmul.mubr.bf16.gmra.mrb[132].mxu0 %v4587_v40  ;;  %4244 = vmatmul.mubr.bf16.gmra.mrb[4].mxu1 %v4977_v33 }
 0x140   : > { %2061 = vmatprep.mubr.bf16.mxu0 %v5241_v27  ;;  %4247 = vmatprep.mubr.bf16.mxu1 %v4989_v10 }
 0x142   : > { %v3761_v18 = vpop.f32.mrb[28].mxu0  ;;  %v3873_v7 = vpop.f32.mrb[28].mxu1 }
 0x143   : > { %v3762_v34 = vpop.f32.mrb[29].mxu0  ;;  %v3874_v50 = vpop.f32.mrb[29].mxu1 }
 0x144   : > { %v5471_v5 = vadd.f32 %v3762_v34, %v3761_v18  ;;  %v3764_v38 = vpop.f32.mrb[30].mxu0  ;;  %v5476_v27 = vadd.f32 %v3874_v50, %v3873_v7  ;;  %v3876_v33 = vpop.f32.mrb[30].mxu1 }
 0x145   : > { %v3765_v20 = vpop.f32.mrb[31].mxu0  ;;  %v3877_v63 = vpop.f32.mrb[31].mxu1 }
 0x146   : > { %v5474_v55 = vadd.f32 %v3765_v20, %v3764_v38  ;;  %v5479_v15 = vadd.f32 %v3877_v63, %v3876_v33 }
 0x147   : > { %2062 = vmatmul.mubr.bf16.gmra.mrb[136].mxu0 %v4588_v59  ;;  %4248 = vmatmul.mubr.bf16.gmra.mrb[8].mxu1 %v5031_v1 }
 0x148   : > { %2069 = vmatprep.mubr.bf16.mxu0 %v749_v13  ;;  %4251 = vmatprep.mubr.bf16.mxu1 %v5043_v16 }
 0x14a   : > { %v3767_v10 = vpop.f32.mrb[32].mxu0  ;;  %v3879_v52 = vpop.f32.mrb[32].mxu1 }
 0x14b   : > { %v3768_v51 = vpop.f32.mrb[33].mxu0  ;;  %v3880_v24 = vpop.f32.mrb[33].mxu1 }
 0x14c   : > { %v3769_v17 = vadd.f32 %v3768_v51, %v3767_v10  ;;  %v3770_v43 = vpop.f32.mrb[34].mxu0  ;;  %v5484_v41 = vadd.f32 %v3880_v24, %v3879_v52  ;;  %v3882_v9 = vpop.f32.mrb[34].mxu1 }
 0x14d   : > { %v3771_v3 = vpop.f32.mrb[35].mxu0  ;;  %v3883_v42 = vpop.f32.mrb[35].mxu1 }
 0x14e   : > { %v3772_v49 = vadd.f32 %v3771_v3, %v3770_v43  ;;  %v5488_v1 = vadd.f32 %v3883_v42, %v3882_v9 }
 0x14f   : > { %2070 = vmatmul.mubr.bf16.gmra.mrb[140].mxu0 %v5444_v47  ;;  %4252 = vmatmul.mubr.bf16.gmra.mrb[12].mxu1 %v822_v12 }
 0x152   : > { %v3773_v16 = vpop.f32.mrb[36].mxu0  ;;  %v3885_v28 = vpop.f32.mrb[36].mxu1 }
 0x153   : > { %v3774_v45 = vpop.f32.mrb[37].mxu0  ;;  %v3886_v8 = vpop.f32.mrb[37].mxu1 }
 0x154   : > { %v3775_v58 = vadd.f32 %v3774_v45, %v3773_v16  ;;  %v3776_v32 = vpop.f32.mrb[38].mxu0  ;;  %v5490_v37 = vadd.f32 %v3886_v8, %v3885_v28  ;;  %v3888_v11 = vpop.f32.mrb[38].mxu1 }
 0x155   : > { %v3777_v25 = vpop.f32.mrb[39].mxu0  ;;  %v3889_v26 = vpop.f32.mrb[39].mxu1 }
 0x156   : > { %v3778_v35 = vadd.f32 %v3777_v25, %v3776_v32  ;;  %v5492_v40 = vadd.f32 %v3889_v26, %v3888_v11 }
 0x15a   : > { %v3779_v56 = vpop.f32.mrb[40].mxu0  ;;  %v3891_v34 = vpop.f32.mrb[40].mxu1 }
 0x15b   : > { %v3780_v31 = vpop.f32.mrb[41].mxu0  ;;  %v3892_v7 = vpop.f32.mrb[41].mxu1 }
 0x15c   : > { %v3781_v47 = vadd.f32 %v3780_v31, %v3779_v56  ;;  %v3782_v18 = vpop.f32.mrb[42].mxu0  ;;  %v5494_v50 = vadd.f32 %v3892_v7, %v3891_v34  ;;  %v3894_v13 = vpop.f32.mrb[42].mxu1 }
 0x15d   : > { %v3783_v38 = vpop.f32.mrb[43].mxu0  ;;  %v3895_v33 = vpop.f32.mrb[43].mxu1 }
 0x15e   : > { %v3784_v20 = vadd.f32 %v3783_v38, %v3782_v18  ;;  %v5496_v63 = vadd.f32 %v3895_v33, %v3894_v13 }
 0x162   : > { %v3785_v59 = vpop.f32.mrb[44].mxu0  ;;  %v3897_v51 = vpop.f32.mrb[44].mxu1 }
 0x163   : > { %v3786_v10 = vpop.f32.mrb[45].mxu0  ;;  %v3898_v52 = vpop.f32.mrb[45].mxu1 }
 0x164   : > { %v5498_v57 = vadd.f32 %v3786_v10, %v3785_v59  ;;  %v3788_v30 = vpop.f32.mrb[46].mxu0  ;;  %v5500_v24 = vadd.f32 %v3898_v52, %v3897_v51  ;;  %v3900_v9 = vpop.f32.mrb[46].mxu1 }
 0x165   : > { %v3789_v43 = vpop.f32.mrb[47].mxu0  ;;  %v3901_v12 = vpop.f32.mrb[47].mxu1 }
 0x166   : > { %v3790_v3 = vadd.f32 %v3789_v43, %v3788_v30  ;;  %v5502_v42 = vadd.f32 %v3901_v12, %v3900_v9 }
 0x16a   : > { %v3791_v16 = vpop.f32.mrb[48].mxu0  ;;  %v3903_v32 = vpop.f32.mrb[48].mxu1 }
 0x16b   : > { %v3792_v45 = vpop.f32.mrb[49].mxu0  ;;  %v3904_v8 = vpop.f32.mrb[49].mxu1 }
 0x16c   : > { %v5504_v28 = vadd.f32 %v3792_v45, %v3791_v16  ;;  %v3794_v25 = vpop.f32.mrb[50].mxu0  ;;  %v3905_v26 = vadd.f32 %v3904_v8, %v3903_v32  ;;  %v3906_v56 = vpop.f32.mrb[50].mxu1 }
 0x16d   : > { %v3795_v11 = vpop.f32.mrb[51].mxu0  ;;  %v3907_v18 = vpop.f32.mrb[51].mxu1 }
 0x16e   : > { %v5506_v31 = vadd.f32 %v3795_v11, %v3794_v25  ;;  %v5508_v34 = vadd.f32 %v3905_v26, %v3769_v17  ;;  %v3908_v38 = vadd.f32 %v3907_v18, %v3906_v56 }
 0x170   : > { %v5510_v7 = vadd.f32 %v3908_v38, %v3772_v49 }
 0x172   : > { %v3797_v13 = vpop.f32.mrb[52].mxu0  ;;  %v3909_v59 = vpop.f32.mrb[52].mxu1 }
 0x173   : > { %v3798_v33 = vpop.f32.mrb[53].mxu0  ;;  %v3910_v51 = vpop.f32.mrb[53].mxu1 }
 0x174   : > { %v5512_v10 = vadd.f32 %v3798_v33, %v3797_v13  ;;  %v3800_v30 = vpop.f32.mrb[54].mxu0  ;;  %v3911_v52 = vadd.f32 %v3910_v51, %v3909_v59  ;;  %v3912_v9 = vpop.f32.mrb[54].mxu1 }
 0x175   : > { %v3801_v43 = vpop.f32.mrb[55].mxu0  ;;  %v3913_v16 = vpop.f32.mrb[55].mxu1 }
 0x176   : > { %v5514_v12 = vadd.f32 %v3801_v43, %v3800_v30  ;;  %v5516_v45 = vadd.f32 %v3911_v52, %v3775_v58  ;;  %v3914_v17 = vadd.f32 %v3913_v16, %v3912_v9 }
 0x178   : > { %v5518_v32 = vadd.f32 %v3914_v17, %v3778_v35 }
 0x17a   : > { %6364 = vst [vmem:[#allocation5_spill] sm:$0xff] %v5518_v32  ;;  %v3803_v49 = vpop.f32.mrb[56].mxu0  ;;  %v3915_v8 = vpop.f32.mrb[56].mxu1 }
 0x17b   : > { %v3804_v25 = vpop.f32.mrb[57].mxu0  ;;  %v3916_v56 = vpop.f32.mrb[57].mxu1 }
 0x17c   : > { %v5520_v11 = vadd.f32 %v3804_v25, %v3803_v49  ;;  %v3806_v26 = vpop.f32.mrb[58].mxu0  ;;  %v3917_v38 = vadd.f32 %v3916_v56, %v3915_v8  ;;  %v3918_v13 = vpop.f32.mrb[58].mxu1 }
 0x17d   : > { %v3807_v18 = vpop.f32.mrb[59].mxu0  ;;  %v3919_v59 = vpop.f32.mrb[59].mxu1 }
 0x17e   : > { %v5522_v33 = vadd.f32 %v3807_v18, %v3806_v26  ;;  %v5524_v30 = vadd.f32 %v3917_v38, %v3781_v47  ;;  %v3920_v58 = vadd.f32 %v3919_v59, %v3918_v13 }
 0x180   : > { %6365 = vst [vmem:[#allocation6_spill] sm:$0xff] %v5524_v30  ;;  %v5526_v51 = vadd.f32 %v3920_v58, %v3784_v20 }
 0x182   : > { %6366 = vst [vmem:[#allocation7_spill] sm:$0xff] %v5526_v51  ;;  %v3809_v35 = vpop.f32.mrb[60].mxu0  ;;  %v3921_v52 = vpop.f32.mrb[60].mxu1 }
 0x183   : > { %v3810_v43 = vpop.f32.mrb[61].mxu0  ;;  %v3922_v17 = vpop.f32.mrb[61].mxu1 }
 0x184   : > { %v5528_v9 = vadd.f32 %v3810_v43, %v3809_v35  ;;  %v3812_v16 = vpop.f32.mrb[62].mxu0  ;;  %v3923_v25 = vadd.f32 %v3922_v17, %v3921_v52  ;;  %v3924_v32 = vpop.f32.mrb[62].mxu1 }
 0x185   : > { %v3813_v49 = vpop.f32.mrb[63].mxu0  ;;  %v3925_v26 = vpop.f32.mrb[63].mxu1 }
 0x186   : > { %v5530_v8 = vadd.f32 %v3813_v49, %v3812_v16  ;;  %v5533_v56 = vadd.f32 %v3923_v25, %v5498_v57  ;;  %v3926_v47 = vadd.f32 %v3925_v26, %v3924_v32 }
 0x188   : > { %6367 = vst [vmem:[#allocation8_spill] sm:$0xff] %v5533_v56  ;;  %v5535_v18 = vadd.f32 %v3926_v47, %v3790_v3 }
 0x18a   : > { %6368 = vst [vmem:[#allocation9_spill] sm:$0xff] %v5535_v18  ;;  %v4129_v20 = vpop.f32.mrb[64].mxu0  ;;  %v3927_v59 = vpop.f32.mrb[64].mxu1 }
 0x18b   : > { %v1189_v38 = vadd.f32 %v4129_v20, %v5401_v22  ;;  %v1180_v13 = vpop.f32.mrb[65].mxu0  ;;  %v3928_v52 = vpop.f32.mrb[65].mxu1 }
 0x18c   : > { %v1181_v58 = vadd.f32 %v5393_v61, %v1180_v13  ;;  %v4130_v35 = vpop.f32.mrb[66].mxu0  ;;  %v3929_v3 = vadd.f32 %v3928_v52, %v3927_v59  ;;  %v3930_v32 = vpop.f32.mrb[66].mxu1 }
 0x18d   : > { %v5540_v43 = vadd.f32 %v5448_v6, %v1189_v38  ;;  %v1192_v16 = vadd.f32 %v4130_v35, %v5404_v23  ;;  %v1183_v17 = vpop.f32.mrb[67].mxu0  ;;  %v3931_v25 = vpop.f32.mrb[67].mxu1 }
 0x18e   : > { %v5544_v57 = vadd.f32 %v5433_v2, %v1181_v58  ;;  %v1184_v49 = vadd.f32 %v5395_v62, %v1183_v17  ;;  %v5551_v61 = vadd.f32 %v3929_v3, %v5504_v28  ;;  %v3932_v26 = vadd.f32 %v3931_v25, %v3930_v32 }
 0x18f   : > { %v5548_v22 = vadd.f32 %v5451_v39, %v1192_v16 }
 0x190   : > { %6369 = vst [vmem:[#allocation10_spill] sm:$0xff] %v5551_v61  ;;  %v5554_v6 = vadd.f32 %v5436_v29, %v1184_v49  ;;  %v5557_v23 = vadd.f32 %v3932_v26, %v5506_v31  ;;  %v5791_v61 = vld [vmem:[%s4819_s7 + $0xb0] sm:$0x1] }
 0x191   : > { %6387 = vst [vmem:[#allocation28_spill] sm:$0xff] %v5791_v61 }
 0x192   : > { %6370 = vst [vmem:[#allocation11_spill] sm:$0xff] %v5557_v23  ;;  %v4133_v2 = vpop.f32.mrb[68].mxu0  ;;  %v3933_v38 = vpop.f32.mrb[68].mxu1 }
 0x193   : > { %v1205_v47 = vadd.f32 %v4133_v2, %v5420_v19  ;;  %v1196_v20 = vpop.f32.mrb[69].mxu0  ;;  %v3934_v28 = vpop.f32.mrb[69].mxu1 }
 0x194   : > { %v1197_v62 = vadd.f32 %v5410_v21, %v1196_v20  ;;  %v4134_v39 = vpop.f32.mrb[70].mxu0  ;;  %v3935_v31 = vadd.f32 %v3934_v28, %v3933_v38  ;;  %v3936_v35 = vpop.f32.mrb[70].mxu1 }
 0x195   : > { %v5562_v13 = vadd.f32 %v5476_v27, %v1205_v47  ;;  %v1208_v59 = vadd.f32 %v4134_v39, %v5423_v48  ;;  %v1199_v29 = vpop.f32.mrb[71].mxu0  ;;  %v3937_v16 = vpop.f32.mrb[71].mxu1 }
 0x196   : > { %v5566_v58 = vadd.f32 %v5463_v0, %v1197_v62  ;;  %v1200_v52 = vadd.f32 %v5414_v54, %v1199_v29  ;;  %v5573_v21 = vadd.f32 %v3935_v31, %v5512_v10  ;;  %v3938_v17 = vadd.f32 %v3937_v16, %v3936_v35 }
 0x197   : > { %v5570_v19 = vadd.f32 %v5479_v15, %v1208_v59 }
 0x198   : > { %6371 = vst [vmem:[#allocation12_spill] sm:$0xff] %v5573_v21  ;;  %v5576_v27 = vadd.f32 %v5466_v4, %v1200_v52  ;;  %v5579_v48 = vadd.f32 %v3938_v17, %v5514_v12 }
 0x19a   : > { %6372 = vst [vmem:[#allocation13_spill] sm:$0xff] %v5579_v48  ;;  %v4137_v0 = vpop.f32.mrb[72].mxu0  ;;  %v3939_v49 = vpop.f32.mrb[72].mxu1 }
 0x19b   : > { %v1221_v3 = vadd.f32 %v4137_v0, %v5441_v53  ;;  %v1212_v32 = vpop.f32.mrb[73].mxu0  ;;  %v3940_v10 = vpop.f32.mrb[73].mxu1 }
 0x19c   : > { %v1213_v54 = vadd.f32 %v5429_v60, %v1212_v32  ;;  %v4138_v15 = vpop.f32.mrb[74].mxu0  ;;  %v3941_v12 = vadd.f32 %v3940_v10, %v3939_v49  ;;  %v3942_v47 = vpop.f32.mrb[74].mxu1 }
 0x19d   : > { %v5584_v25 = vadd.f32 %v5490_v37, %v1221_v3  ;;  %v1224_v26 = vadd.f32 %v4138_v15, %v5446_v36  ;;  %v1215_v4 = vpop.f32.mrb[75].mxu0  ;;  %v3943_v38 = vpop.f32.mrb[75].mxu1 }
 0x19e   : > { %v5588_v2 = vadd.f32 %v5484_v41, %v1213_v54  ;;  %v1216_v20 = vadd.f32 %v5431_v14, %v1215_v4  ;;  %v5595_v60 = vadd.f32 %v3941_v12, %v5520_v11  ;;  %v3944_v62 = vadd.f32 %v3943_v38, %v3942_v47 }
 0x19f   : > { %v5592_v53 = vadd.f32 %v5492_v40, %v1224_v26 }
 0x1a0   : > { %6373 = vst [vmem:[#allocation14_spill] sm:$0xff] %v5595_v60  ;;  %v1521_v37 = vadd.f32 %v5488_v1, %v1216_v20  ;;  %v5599_v36 = vadd.f32 %v3944_v62, %v5522_v33 }
 0x1a2   : > { %6374 = vst [vmem:[#allocation15_spill] sm:$0xff] %v5599_v36  ;;  %v4141_v39 = vpop.f32.mrb[76].mxu0  ;;  %v3945_v59 = vpop.f32.mrb[76].mxu1 }
 0x1a3   : > { %v1237_v41 = vadd.f32 %v4141_v39, %v5471_v5  ;;  %v1228_v28 = vpop.f32.mrb[77].mxu0  ;;  %v3946_v31 = vpop.f32.mrb[77].mxu1 }
 0x1a4   : > { %v1229_v14 = vadd.f32 %v5458_v46, %v1228_v28  ;;  %v4142_v29 = vpop.f32.mrb[78].mxu0  ;;  %v3947_v33 = vadd.f32 %v3946_v31, %v3945_v59  ;;  %v3948_v52 = vpop.f32.mrb[78].mxu1 }
 0x1a5   : > { %v5604_v40 = vadd.f32 %v5500_v24, %v1237_v41  ;;  %v1240_v11 = vadd.f32 %v4142_v29, %v5474_v55  ;;  %v1231_v35 = vpop.f32.mrb[79].mxu0  ;;  %v3949_v17 = vpop.f32.mrb[79].mxu1 }
 0x1a6   : > { %v5608_v1 = vadd.f32 %v5494_v50, %v1229_v14  ;;  %v1232_v16 = vadd.f32 %v5461_v44, %v1231_v35  ;;  %v5615_v46 = vadd.f32 %v3947_v33, %v5528_v9  ;;  %v3950_v0 = vadd.f32 %v3949_v17, %v3948_v52 }
 0x1a7   : > { %v5612_v5 = vadd.f32 %v5502_v42, %v1240_v11 }
 0x1a8   : > { %6375 = vst [vmem:[#allocation16_spill] sm:$0xff] %v5615_v46  ;;  %v1537_v24 = vadd.f32 %v5496_v63, %v1232_v16  ;;  %v5619_v55 = vadd.f32 %v3950_v0, %v5530_v8  ;;  %v5773_v46 = vld [vmem:[%s4819_s7 + $0x8c] sm:$0x1] }
 0x1a9   : > { %6384 = vst [vmem:[#allocation25_spill] sm:$0xff] %v5773_v46 }
 0x1aa   : > { %6376 = vst [vmem:[#allocation17_spill] sm:$0xff] %v5619_v55  ;;  %v3991_v3 = vpop.f32.mrb[80].mxu0 }
 0x1ab   : > { %v3992_v50 = vpop.f32.mrb[81].mxu0 }
 0x1ac   : > { %v3993_v32 = vadd.f32 %v3992_v50, %v3991_v3  ;;  %v3994_v49 = vpop.f32.mrb[82].mxu0 }
 0x1ad   : > { %v3995_v54 = vpop.f32.mrb[83].mxu0 }
 0x1ae   : > { %v3996_v15 = vadd.f32 %v3995_v54, %v3994_v49  ;;  %v5622_v44 = vadd.f32 %v3993_v32, %v5544_v57 }
 0x1b0   : > { %v5625_v42 = vadd.f32 %v3996_v15, %v5554_v6 }
 0x1b2   : > { %v3997_v9 = vpop.f32.mrb[84].mxu0 }
 0x1b3   : > { %v3998_v10 = vpop.f32.mrb[85].mxu0 }
 0x1b4   : > { %v3999_v26 = vadd.f32 %v3998_v10, %v3997_v9  ;;  %v4000_v63 = vpop.f32.mrb[86].mxu0 }
 0x1b5   : > { %v4001_v4 = vpop.f32.mrb[87].mxu0 }
 0x1b6   : > { %v4002_v12 = vadd.f32 %v4001_v4, %v4000_v63  ;;  %v5628_v8 = vadd.f32 %v3999_v26, %v5540_v43 }
 0x1b8   : > { %v5631_v47 = vadd.f32 %v4002_v12, %v5548_v22 }
 0x1ba   : > { %v4003_v20 = vpop.f32.mrb[88].mxu0 }
 0x1bb   : > { %v4004_v38 = vpop.f32.mrb[89].mxu0 }
 0x1bc   : > { %v4005_v62 = vadd.f32 %v4004_v38, %v4003_v20  ;;  %v4006_v57 = vpop.f32.mrb[90].mxu0  ;;  %v5665_v38 = vld [vmem:[%s4819_s7 + $0xc] sm:$0xff]  }
 0x1bd   : > { %v4007_v39 = vpop.f32.mrb[91].mxu0 }
 0x1be   : > { %v4008_v41 = vadd.f32 %v4007_v39, %v4006_v57  ;;  %v5634_v6 = vadd.f32 %v4005_v62, %v5566_v58  ;;  %v5668_v62 = vld [vmem:[%s4819_s7 + $0x20] sm:$0x1]  ;;  %v5671_v57 = vld [vmem:[%s4819_s7 + $0x14] sm:$0x1] }
 0x1bf   : > { %v5674_v39 = vld [vmem:[%s4819_s7 + $0x30] sm:$0xff]  }
 0x1c0   : > { %v5637_v28 = vadd.f32 %v4008_v41, %v5576_v27 }
 0x1c2   : > { %v4009_v59 = vpop.f32.mrb[92].mxu0 }
 0x1c3   : > { %v4010_v14 = vpop.f32.mrb[93].mxu0 }
 0x1c4   : > { %v4011_v29 = vadd.f32 %v4010_v14, %v4009_v59  ;;  %v4012_v43 = vpop.f32.mrb[94].mxu0 }
 0x1c5   : > { %v4013_v31 = vpop.f32.mrb[95].mxu0 }
 0x1c6   : > { %v4014_v11 = vadd.f32 %v4013_v31, %v4012_v43  ;;  %v5640_v22 = vadd.f32 %v4011_v29, %v5562_v13  ;;  %v5683_v31 = vld [vmem:[%s4819_s7 + $0x38] sm:$0x1] }
 0x1c8   : > { %v5643_v35 = vadd.f32 %v4014_v11, %v5570_v19  ;;  %v5686_v11 = vld [vmem:[%s4819_s7 + $0x2c] sm:$0x1] }
 0x1ca   : > { %v4015_v33 = vpop.f32.mrb[96].mxu0 }
 0x1cb   : > { %v4016_v52 = vpop.f32.mrb[97].mxu0 }
 0x1cc   : > { %v4017_v16 = vadd.f32 %v4016_v52, %v4015_v33  ;;  %v4018_v58 = vpop.f32.mrb[98].mxu0  ;;  %v5689_v33 = vld [vmem:[%s4819_s7 + $0x48] sm:$0xff]  }
 0x1cd   : > { %v4019_v17 = vpop.f32.mrb[99].mxu0 }
 0x1ce   : > { %v4020_v0 = vadd.f32 %v4019_v17, %v4018_v58  ;;  %v5646_v27 = vadd.f32 %v4017_v16, %v5588_v2 }
 0x1d0   : > { %v5648_v3 = vadd.f32 %v4020_v0, %v1521_v37  ;;  %v5748_v0 = vld [vmem:[%s4819_s7 + $0x90] sm:$0xff]  }
 0x1d1   : > { %6381 = vst [vmem:[#allocation22_spill] sm:$0xff] %v5748_v0 }
 0x1d2   : > { %v4021_v50 = vpop.f32.mrb[100].mxu0 }
 0x1d3   : > { %v4022_v32 = vpop.f32.mrb[101].mxu0 }
 0x1d4   : > { %v4023_v13 = vadd.f32 %v4022_v32, %v4021_v50  ;;  %v4024_v49 = vpop.f32.mrb[102].mxu0  ;;  %v5696_v50 = vld [vmem:[%s4819_s7 + $0x3c] sm:$0xff]   ;;  %v5699_v32 = vld [vmem:[%s4819_s7 + $0x50] sm:$0x1] }
 0x1d5   : > { %v4025_v19 = vpop.f32.mrb[103].mxu0 }
 0x1d6   : > { %v4026_v54 = vadd.f32 %v4025_v19, %v4024_v49  ;;  %v5651_v15 = vadd.f32 %v4023_v13, %v5584_v25  ;;  %v5662_v25 = vld [vmem:[%s4819_s7 + $0x18] sm:$0xff]  }
 0x1d8   : > { %v5654_v9 = vadd.f32 %v4026_v54, %v5592_v53  ;;  %v5704_v54 = vld [vmem:[%s4819_s7 + $0x44] sm:$0x1] }
 0x1da   : > { %v4027_v2 = vpop.f32.mrb[104].mxu0 }
 0x1db   : > { %v4028_v37 = vpop.f32.mrb[105].mxu0 }
 0x1dc   : > { %v4029_v10 = vadd.f32 %v4028_v37, %v4027_v2  ;;  %v4030_v26 = vpop.f32.mrb[106].mxu0  ;;  %v5710_v37 = vld [vmem:[%s4819_s7 + $0x60] sm:$0xff]  }
 0x1dd   : > { %v4031_v63 = vpop.f32.mrb[107].mxu0 }
 0x1de   : > { %v4032_v4 = vadd.f32 %v4031_v63, %v4030_v26  ;;  %v5657_v12 = vadd.f32 %v4029_v10, %v5608_v1  ;;  %v5677_v1 = vld [vmem:[%s4819_s7 + $0x24] sm:$0xff]   ;;  %v5713_v10 = vld [vmem:[%s4819_s7 + $0x54] sm:$0xff]  }
 0x1df   : > { %v5732_v63 = vld [vmem:[%s4819_s7 + $0x78] sm:$0xff]   ;;  %v5755_v26 = vld [vmem:[%s4819_s7 + $0x84] sm:$0xff]  }
 0x1e0   : > { %v5659_v20 = vadd.f32 %v4032_v4, %v1537_v24  ;;  %6377 = vst [vmem:[#allocation18_spill] sm:$0xff] %v5732_v63  ;;  %v5735_v4 = vld [vmem:[%s4819_s7 + $0x6c] sm:$0xff]   ;;  %6382 = vst [vmem:[#allocation23_spill] sm:$0xff] %v5755_v26 }
 0x1e1   : > { %6378 = vst [vmem:[#allocation19_spill] sm:$0xff] %v5735_v4 }
 0x1e2   : > { %v4033_v53 = vpop.f32.mrb[108].mxu0 }
 0x1e3   : > { %v4034_v41 = vpop.f32.mrb[109].mxu0 }
 0x1e4   : > { %v4035_v59 = vadd.f32 %v4034_v41, %v4033_v53  ;;  %v4036_v24 = vpop.f32.mrb[110].mxu0  ;;  %v5720_v41 = vld [vmem:[%s4819_s7 + $0x68] sm:$0x1]  ;;  %v5738_v53 = vld [vmem:[%s4819_s7 + $0x80] sm:$0x1] }
 0x1e5   : > { %v4037_v52 = vpop.f32.mrb[111].mxu0  ;;  %6379 = vst [vmem:[#allocation20_spill] sm:$0xff] %v5738_v53 }
 0x1e6   : > { %v4038_v13 = vadd.f32 %v4037_v52, %v4036_v24  ;;  %v5707_v2 = vadd.f32 %v4035_v59, %v5604_v40  ;;  %v5723_v24 = vld [vmem:[%s4819_s7 + $0x5c] sm:$0x1]  ;;  %v5745_v52 = vld [vmem:[%s4819_s7 + $0x74] sm:$0x1]  ;;  %v5758_v40 = vld [vmem:[%s4819_s7 + $0x98] sm:$0x1] }
 0x1e7   : > { %6380 = vst [vmem:[#allocation21_spill] sm:$0xff] %v5745_v52  ;;  %6383 = vst [vmem:[#allocation24_spill] sm:$0xff] %v5758_v40  ;;  %v5763_v59 = vld [vmem:[%s6338_s2] ss:$0 sm:$0xff] }
 0x1e8   : > { %v5729_v49 = vadd.f32 %v4038_v13, %v5612_v5  ;;  %v5776_v13 = vld [vmem:[%s4819_s7 + $0xa8] sm:$0xff]  }
 0x1e9   : > { %6385 = vst [vmem:[#allocation26_spill] sm:$0xff] %v5776_v13 }
 0x1ea   : > { %v4039_v5 = vpop.f32.mrb[112].mxu0  ;;  %v4225_v16 = vpop.f32.mrb[80].mxu1 }
 0x1eb   : > { %v4040_v19 = vpop.f32.mrb[113].mxu0  ;;  %v4274_v58 = vadd.f32 %v5628_v8, %v4225_v16  ;;  %v2112_v17 = vpop.f32.mrb[81].mxu1  ;;  %v5788_v16 = vld [vmem:[%s4819_s7 + $0x9c] sm:$0xff]  }
 0x1ec   : > { %v4041_v43 = vadd.f32 %v4040_v19, %v4039_v5  ;;  %v4042_v14 = vpop.f32.mrb[114].mxu0  ;;  %v4278_v55 = vadd.f32 %v5622_v44, %v2112_v17  ;;  %v4226_v23 = vpop.f32.mrb[82].mxu1  ;;  %6386 = vst [vmem:[#allocation27_spill] sm:$0xff] %v5788_v16 }
 0x1ed   : > { %v4043_v29 = vpop.f32.mrb[115].mxu0  ;;  %v2279_v19 = vadd.f32 %v4274_v58, %v5763_v59  ;;  %v4282_v5 = vadd.f32 %v5631_v47, %v4226_v23  ;;  %v2115_v36 = vpop.f32.mrb[83].mxu1  ;;  %v5807_v58 = vld [vmem:[%s4819_s7 + $0xc0] sm:$0xff]   ;;  %v5810_v23 = vld [vmem:[%s4819_s7 + $0xb4] sm:$0xff]  }
 0x1ee   : > { %v4044_v60 = vadd.f32 %v4043_v29, %v4042_v14  ;;  %v5784_v48 = vadd.f32 %v5508_v34, %v4041_v43  ;;  %v5798_v14 = vld [vmem:[%s4819_s7 + $0xa4] sm:$0x1]  ;;  %v2277_v34 = vadd.f32 %v4278_v55, %v5763_v59  ;;  %v4286_v29 = vadd.f32 %v5625_v42, %v2115_v36  ;;  %6390 = vst [vmem:[#allocation31_spill] sm:$0xff] %v5807_v58  ;;  %v5819_v42 = vld [vmem:[%s4819_s7 + $0xc8] sm:$0x1] }
 0x1ef   : > { %6388 = vst [vmem:[#allocation29_spill] sm:$0xff] %v5798_v14  ;;  %6391 = vst [vmem:[#allocation32_spill] sm:$0xff] %v5810_v23  ;;  %v2311_v47 = vmax.f32 %v2279_v19, 0.0  ;;  %v2280_v44 = vadd.f32 %v4282_v5, %v5763_v59 }
 0x1f0   : > { %v5803_v43 = vadd.f32 %v5510_v7, %v4044_v60  ;;  %v2309_v40 = vmax.f32 %v2277_v34, 0.0  ;;  %v2278_v55 = vadd.f32 %v4286_v29, %v5763_v59  ;;  %6392 = vst [vmem:[#allocation33_spill] sm:$0xff] %v5819_v42  ;;  %v6393_v60 = vunpack.c.l.bf16 %v5662_v25 }
 0x1f1   : > { %v2474_v8 = vrot.slane %v2311_v47, 7  ;;  %v2312_v13 = vmax.f32 %v2280_v44, 0.0 }
 0x1f2   : > { %6389 = vst [vmem:[#allocation30_spill] sm:$0xff] %v5803_v43  ;;  %v4045_v36 = vpop.f32.mrb[116].mxu0  ;;  %v2471_v46 = vrot.slane %v2309_v40, 7  ;;  %v2310_v34 = vmax.f32 %v2278_v55, 0.0  ;;  %v4229_v61 = vpop.f32.mrb[84].mxu1  ;;  %v6394_v40 = vunpack.c.l.bf16 %v5665_v38 }
 0x1f3   : > { %v4046_v19 = vpop.f32.mrb[117].mxu0  ;;  %v2570_v14 = vadd.f32 %v6393_v60, %v2474_v8  ;;  %v2475_v47 = vrot.slane %v2312_v13, 7  ;;  %v4290_v44 = vadd.f32 %v5640_v22, %v4229_v61  ;;  %v2128_v16 = vpop.f32.mrb[85].mxu1  ;;  %v6395_v13 = vunpack.c.l.bf16 %v5668_v62 }
 0x1f4   : > { %v5823_v29 = vadd.f32 %v4046_v19, %v4045_v36  ;;  %v4048_v26 = vpop.f32.mrb[118].mxu0  ;;  %v2567_v55 = vadd.f32 %v2471_v46, %v6394_v40  ;;  %v2472_v17 = vrot.slane %v2310_v34, 7  ;;  %v4294_v36 = vadd.f32 %v5634_v6, %v2128_v16  ;;  %v4230_v19 = vpop.f32.mrb[86].mxu1 }
 0x1f5   : > { %v4049_v21 = vpop.f32.mrb[119].mxu0  ;;  %v3617_v7 = vpack.c.bf16 %v2570_v14, %v2570_v14  ;;  %v2476_v60 = vsel %vm2470_vm2, %v2474_v8, %v2475_v47  ;;  %v2572_v58 = vadd.f32 %v2475_v47, %v6395_v13  ;;  %v2283_v61 = vadd.f32 %v4290_v44, %v5763_v59  ;;  %v2131_v22 = vpop.f32.mrb[87].mxu1 }
 0x1f6   : > { %v5833_v23 = vadd.f32 %v4049_v21, %v4048_v26  ;;  %v3614_v51 = vpack.c.bf16 %v2567_v55, %v2567_v55  ;;  %v6396_v40 = vunpack.c.h.bf16 %v5662_v25  ;;  %v2473_v6 = vsel %vm2470_vm2, %v2471_v46, %v2472_v17 }
 0x1f7   : > { %v6397_v21 = vunpack.c.l.bf16 %v5671_v57  ;;  %v2803_v16 = vshrl.u32 %v3617_v7, 16  ;;  %v2806_v14 = vshll.u32 %v3617_v7, 16  ;;  %v3619_v8 = vpack.c.bf16 %v2572_v58, %v2572_v58 }
 0x1f8   : > { %v2571_v34 = vadd.f32 %v6396_v40, %v2476_v60  ;;  %v6398_v62 = vunpack.c.h.bf16 %v5665_v38  ;;  %v2779_v13 = vshrl.u32 %v3614_v51, 16  ;;  %v2782_v44 = vshll.u32 %v3614_v51, 16 }
 0x1f9   : > { %v2569_v26 = vadd.f32 %v2472_v17, %v6397_v21  ;;  %v2805_v18 = vrot.slane %v2803_v16, 4  ;;  %v2808_v0 = vrot.slane %v2806_v14, 5  ;;  %v2822_v46 = vshll.u32 %v3619_v8, 16 }
 0x1fa   : > { %v2568_v47 = vadd.f32 %v2473_v6, %v6398_v62  ;;  %v3618_v5 = vpack.c.bf16 %v2571_v34, %v2571_v34  ;;  %v4051_v42 = vpop.f32.mrb[120].mxu0  ;;  %v2781_v17 = vrot.slane %v2779_v13, 4  ;;  %v2784_v60 = vrot.slane %v2782_v44, 5  ;;  %v4233_v40 = vpop.f32.mrb[88].mxu1 }
 0x1fb   : > { %v3616_v55 = vpack.c.bf16 %v2569_v26, %v2569_v26  ;;  %v4052_v57 = vpop.f32.mrb[121].mxu0  ;;  %v2809_v6 = vor.u32 %v2808_v0, %v2805_v18  ;;  %v2824_v51 = vrot.slane %v2822_v46, 5  ;;  %v2144_v26 = vpop.f32.mrb[89].mxu1  ;;  %v2315_v46 = vmax.f32 %v2283_v61, 0.0 }
 0x1fc   : > { %v3615_v25 = vpack.c.bf16 %v2568_v47, %v2568_v47  ;;  %v2812_v7 = vshll.u32 %v3618_v5, 16  ;;  %v2816_v58 = vshrl.u32 %v3618_v5, 16  ;;  %v5851_v38 = vpop.f32.mrb[122].mxu0  ;;  %v2785_v14 = vor.u32 %v2784_v60, %v2781_v17  ;;  %v4234_v13 = vpop.f32.mrb[90].mxu1 }
 0x1fd   : > { %v5853_v16 = vpop.f32.mrb[123].mxu0  ;;  %v2798_v5 = vshll.u32 %v3616_v55, 16  ;;  %v2810_v44 = vrot.slane %v2809_v6, 4  ;;  %v2281_v60 = vadd.f32 %v4294_v36, %v5763_v59  ;;  %v4298_v55 = vadd.f32 %v5643_v35, %v4230_v19 }
 0x1fe   : > { %v2788_v34 = vshll.u32 %v3615_v25, 16  ;;  %v2792_v21 = vshrl.u32 %v3615_v25, 16  ;;  %v2814_v62 = vrot.slane %v2812_v7, 5  ;;  %v2818_v47 = vrot.slane %v2816_v58, 4  ;;  %v5861_v25 = vpop.f32.mrb[91].mxu1 }
 0x1ff   : > { %v2786_v30 = vrot.slane %v2785_v14, 4  ;;  %v2800_v17 = vrot.slane %v2798_v5, 5  ;;  %v2480_v7 = vrot.slane %v2315_v46, 7  ;;  %v2313_v6 = vmax.f32 %v2281_v60, 0.0 }
 0x200   : > { %v2790_v18 = vrot.slane %v2788_v34, 5  ;;  %v2794_v0 = vrot.slane %v2792_v21, 4  ;;  %v2819_v52 = vor.u32 %v2818_v47, %v2814_v62  ;;  %v2815_v53 = vsel %vm5857_vm5, %v2810_v44, %v2814_v62 }
 0x201   : > { %3196 = vst [vmem:[%s5868_s17 + $0x8] sm:$0xf] %v2815_v53  ;;  %v4302_v36 = vadd.f32 %v5637_v28, %v2131_v22  ;;  %v6401_v14 = vunpack.c.l.bf16 %v5674_v39  ;;  %v4306_v19 = vadd.f32 %v5651_v15, %v4233_v40  ;;  %v2477_v62 = vrot.slane %v2313_v6, 7 }
 0x202   : > { %v2795_v4 = vor.u32 %v2794_v0, %v2790_v18  ;;  %v2820_v58 = vrot.slane %v2819_v52, 4  ;;  %v2791_v61 = vsel %vm5857_vm5, %v2786_v30, %v2790_v18  ;;  %v5874_v34 = vpop.f32.mrb[124].mxu0  ;;  %v2284_v52 = vadd.f32 %v4298_v55, %v5763_v59 }
 0x203   : > { %3194 = vst [vmem:[%s5868_s17] sm:$0xf] %v2791_v61  ;;  %v2576_v35 = vadd.f32 %v6401_v14, %v2480_v7  ;;  %v5881_v53 = vpop.f32.mrb[125].mxu0  ;;  %v2282_v28 = vadd.f32 %v4302_v36, %v5763_v59  ;;  %v5886_v22 = vadd.f32 %v4052_v57, %v4051_v42  ;;  %v2287_v40 = vadd.f32 %v4306_v19, %v5763_v59 }
 0x204   : > { %v2796_v21 = vrot.slane %v2795_v4, 4  ;;  %v2825_v30 = vsel %vm5857_vm5, %v2820_v58, %v2824_v51  ;;  %v5888_v4 = vpop.f32.mrb[92].mxu1  ;;  %v5890_v47 = vpop.f32.mrb[126].mxu0  ;;  %v2316_v15 = vmax.f32 %v2284_v52, 0.0  ;;  %v6403_v42 = vunpack.c.l.bf16 %v5677_v1 }
 0x205   : > { %6402 = vst [vmem:[#allocation34_spill] sm:$0xff] %v5886_v22  ;;  %3197 = vst [vmem:[%s5868_s17 + $0xc] sm:$0xf] %v2825_v30  ;;  %v3623_v44 = vpack.c.bf16 %v2576_v35, %v2576_v35  ;;  %v5896_v18 = vpop.f32.mrb[93].mxu1  ;;  %v5898_v51 = vpop.f32.mrb[127].mxu0  ;;  %v2314_v0 = vmax.f32 %v2282_v28, 0.0  ;;  %v4310_v46 = vadd.f32 %v5646_v27, %v2144_v26  ;;  %v4314_v60 = vadd.f32 %v5654_v9, %v4234_v13 }
 0x206   : > { %v2801_v5 = vsel %vm5857_vm5, %v2796_v21, %v2800_v17  ;;  %v2573_v57 = vadd.f32 %v2477_v62, %v6403_v42  ;;  %v5905_v55 = vpop.f32.mrb[94].mxu1  ;;  %v2481_v61 = vrot.slane %v2316_v15, 7  ;;  %v2319_v6 = vmax.f32 %v2287_v40, 0.0 }
 0x207   : > { %3195 = vst [vmem:[%s5868_s17 + $0x4] sm:$0xf] %v2801_v5  ;;  %v2851_v17 = vshrl.u32 %v3623_v44, 16  ;;  %v2854_v58 = vshll.u32 %v3623_v44, 16  ;;  %v5907_v36 = vpop.f32.mrb[95].mxu1  ;;  %v2478_v14 = vrot.slane %v2314_v0, 7  ;;  %v2285_v35 = vadd.f32 %v4310_v46, %v5763_v59 }
 0x208   : > { %v3620_v21 = vpack.c.bf16 %v2573_v57, %v2573_v57  ;;  %v5911_v52 = vadd.f32 %v4314_v60, %v5763_v59  ;;  %v2482_v27 = vsel %vm2470_vm2, %v2480_v7, %v2481_v61  ;;  %v6404_v9 = vunpack.c.l.bf16 %v5683_v31 }
 0x209   : > { %v2853_v19 = vrot.slane %v2851_v17, 4  ;;  %v2856_v30 = vrot.slane %v2854_v58, 5  ;;  %v6405_v5 = vunpack.c.h.bf16 %v5674_v39  ;;  %v2479_v15 = vsel %vm2470_vm2, %v2477_v62, %v2478_v14 }
 0x20a   : > { %v2578_v26 = vadd.f32 %v2481_v61, %v6404_v9  ;;  %v2827_v13 = vshrl.u32 %v3620_v21, 16  ;;  %v2830_v28 = vshll.u32 %v3620_v21, 16  ;;  %v5919_v40 = vpop.f32.mrb[128].mxu0  ;;  %v6406_v0 = vunpack.c.h.bf16 %v5677_v1  ;;  %v5927_v39 = vpop.f32.mrb[0].mxu1 }
 0x20b   : > { %v2577_v44 = vadd.f32 %v6405_v5, %v2482_v27  ;;  %v2857_v42 = vor.u32 %v2856_v30, %v2853_v19  ;;  %v6407_v60 = vunpack.c.l.bf16 %v5686_v11  ;;  %v5925_v17 = vpop.f32.mrb[129].mxu0  ;;  %v2486_v21 = vrot.slane %v2319_v6, 7 }
 0x20c   : > { %v3625_v57 = vpack.c.bf16 %v2578_v26, %v2578_v26  ;;  %v2574_v46 = vadd.f32 %v2479_v15, %v6406_v0  ;;  %v2829_v31 = vrot.slane %v2827_v13, 4  ;;  %v2832_v58 = vrot.slane %v2830_v28, 5  ;;  %v5929_v27 = vpop.f32.mrb[130].mxu0  ;;  %v5931_v26 = vpop.f32.mrb[1].mxu1 }
 0x20d   : > { %v2575_v7 = vadd.f32 %v2478_v14, %v6407_v60  ;;  %v3624_v61 = vpack.c.bf16 %v2577_v44, %v2577_v44  ;;  %v2858_v62 = vrot.slane %v2857_v42, 4  ;;  %v5933_v1 = vpop.f32.mrb[131].mxu0  ;;  %v6408_v13 = vunpack.c.l.bf16 %v5689_v33  ;;  %v5937_v44 = vpop.f32.mrb[2].mxu1 }
 0x20e   : > { %v2870_v9 = vshll.u32 %v3625_v57, 16  ;;  %v3621_v19 = vpack.c.bf16 %v2574_v46, %v2574_v46  ;;  %v2833_v11 = vor.u32 %v2832_v58, %v2829_v31  ;;  %v5939_v57 = vpop.f32.mrb[3].mxu1 }
 0x20f   : > { %v3622_v30 = vpack.c.bf16 %v2575_v7, %v2575_v7  ;;  %v2860_v14 = vshll.u32 %v3624_v61, 16  ;;  %v2864_v5 = vshrl.u32 %v3624_v61, 16  ;;  %v2582_v28 = vadd.f32 %v6408_v13, %v2486_v21 }
 0x210   : > { %v2872_v6 = vrot.slane %v2870_v9, 5  ;;  %v2836_v15 = vshll.u32 %v3621_v19, 16  ;;  %v2840_v0 = vshrl.u32 %v3621_v19, 16  ;;  %v2834_v46 = vrot.slane %v2833_v11, 4 }
 0x211   : > { %v2846_v42 = vshll.u32 %v3622_v30, 16  ;;  %v2862_v60 = vrot.slane %v2860_v14, 5  ;;  %v2866_v7 = vrot.slane %v2864_v5, 4  ;;  %v3629_v22 = vpack.c.bf16 %v2582_v28, %v2582_v28 }
 0x212   : > { %v2838_v63 = vrot.slane %v2836_v15, 5  ;;  %v2842_v31 = vrot.slane %v2840_v0, 4  ;;  %v2317_v61 = vmax.f32 %v2285_v35, 0.0  ;;  %v5943_v19 = vpop.f32.mrb[132].mxu0  ;;  %v2320_v5 = vmax.f32 %v5911_v52, 0.0  ;;  %v5956_v0 = vpop.f32.mrb[4].mxu1 }
 0x213   : > { %v2848_v58 = vrot.slane %v2846_v42, 5  ;;  %v2863_v13 = vsel %vm5857_vm5, %v2858_v62, %v2862_v60  ;;  %v2867_v56 = vor.u32 %v2866_v7, %v2862_v60  ;;  %v2899_v9 = vshrl.u32 %v3629_v22, 16  ;;  %v5949_v28 = vpop.f32.mrb[133].mxu0  ;;  %v5964_v7 = vpop.f32.mrb[5].mxu1 }
 0x214   : > { %v2902_v43 = vshll.u32 %v3629_v22, 16  ;;  %3200 = vst [vmem:[%s5868_s17 + $0x18] sm:$0xf] %v2863_v13  ;;  %v2839_v30 = vsel %vm5857_vm5, %v2834_v46, %v2838_v63  ;;  %v2843_v11 = vor.u32 %v2842_v31, %v2838_v63  ;;  %v2483_v14 = vrot.slane %v2317_v61, 7  ;;  %v5958_v42 = vpop.f32.mrb[134].mxu0  ;;  %v5976_v13 = vpop.f32.mrb[6].mxu1 }
 0x215   : > { %v2868_v15 = vrot.slane %v2867_v56, 4  ;;  %3198 = vst [vmem:[%s5868_s17 + $0x10] sm:$0xf] %v2839_v30  ;;  %v2901_v35 = vrot.slane %v2899_v9, 4  ;;  %v5954_v22 = vadd.f32 %v5853_v16, %v5851_v38  ;;  %v6409_v63 = vunpack.c.l.bf16 %v5696_v50 }
 0x216   : > { %v2904_v62 = vrot.slane %v2902_v43, 5  ;;  %v2844_v46 = vrot.slane %v2843_v11, 4  ;;  %v2487_v52 = vrot.slane %v2320_v5, 7  ;;  %v4318_v56 = vadd.f32 %v5648_v3, %v5861_v25  ;;  %v5966_v43 = vpop.f32.mrb[135].mxu0  ;;  %v5984_v11 = vpop.f32.mrb[7].mxu1 }
 0x217   : > { %v2579_v60 = vadd.f32 %v2483_v14, %v6409_v63  ;;  %v2873_v38 = vsel %vm5857_vm5, %v2868_v15, %v2872_v6  ;;  %v4322_v31 = vadd.f32 %v5707_v2, %v5888_v4  ;;  %v5974_v61 = vadd.f32 %v5881_v53, %v5874_v34 }
 0x218   : > { %v2905_v16 = vor.u32 %v2904_v62, %v2901_v35  ;;  %3201 = vst [vmem:[%s5868_s17 + $0x1c] sm:$0xf] %v2873_v38  ;;  %v2849_v3 = vsel %vm5857_vm5, %v2844_v46, %v2848_v58  ;;  %v2488_v9 = vsel %vm2470_vm2, %v2486_v21, %v2487_v52  ;;  %v6410_v30 = vunpack.c.l.bf16 %v5699_v32 }
 0x219   : > { %v3626_v25 = vpack.c.bf16 %v2579_v60, %v2579_v60  ;;  %3199 = vst [vmem:[%s5868_s17 + $0x14] sm:$0xf] %v2849_v3  ;;  %v6411_v4 = vunpack.c.h.bf16 %v5689_v33  ;;  %v2286_v53 = vadd.f32 %v4318_v56, %v5763_v59  ;;  %v2291_v5 = vadd.f32 %v4322_v31, %v5763_v59 }
 0x21a   : > { %v2584_v6 = vadd.f32 %v2487_v52, %v6410_v30  ;;  %v2906_v2 = vrot.slane %v2905_v16, 4  ;;  %v4326_v21 = vadd.f32 %v5657_v12, %v5896_v18  ;;  %v4330_v63 = vadd.f32 %v5729_v49, %v5905_v55  ;;  %v5995_v60 = vpop.f32.mrb[136].mxu0  ;;  %v6000_v12 = vpop.f32.mrb[8].mxu1 }
 0x21b   : > { %v2583_v34 = vadd.f32 %v6411_v4, %v2488_v9  ;;  %v2875_v15 = vshrl.u32 %v3626_v25, 16  ;;  %v2878_v35 = vshll.u32 %v3626_v25, 16  ;;  %v2318_v32 = vmax.f32 %v2286_v53, 0.0  ;;  %v5998_v16 = vpop.f32.mrb[137].mxu0  ;;  %v6005_v4 = vpop.f32.mrb[9].mxu1 }
 0x21c   : > { %v3631_v58 = vpack.c.bf16 %v2584_v6, %v2584_v6  ;;  %v2323_v46 = vmax.f32 %v2291_v5, 0.0  ;;  %v2289_v56 = vadd.f32 %v4326_v21, %v5763_v59  ;;  %v6002_v18 = vpop.f32.mrb[138].mxu0  ;;  %v2292_v55 = vadd.f32 %v4330_v63, %v5763_v59  ;;  %v6012_v21 = vpop.f32.mrb[10].mxu1 }
 0x21d   : > { %v3630_v62 = vpack.c.bf16 %v2583_v34, %v2583_v34  ;;  %v2877_v33 = vrot.slane %v2875_v15, 4  ;;  %v2880_v52 = vrot.slane %v2878_v35, 5  ;;  %v2484_v25 = vrot.slane %v2318_v32, 7  ;;  %v6007_v34 = vpop.f32.mrb[139].mxu0 }
 0x21e   : > { %v2918_v38 = vshll.u32 %v3631_v58, 16  ;;  %v2492_v9 = vrot.slane %v2323_v46, 7  ;;  %v2321_v49 = vmax.f32 %v2289_v56, 0.0  ;;  %v6412_v35 = vunpack.c.l.bf16 %v5704_v54 }
 0x21f   : > { %v2908_v31 = vshll.u32 %v3630_v62, 16  ;;  %v2912_v3 = vshrl.u32 %v3630_v62, 16  ;;  %v2881_v30 = vor.u32 %v2880_v52, %v2877_v33  ;;  %v2485_v15 = vsel %vm2470_vm2, %v2483_v14, %v2484_v25 }
 0x220   : > { %v2920_v6 = vrot.slane %v2918_v38, 5  ;;  %v2581_v58 = vadd.f32 %v2484_v25, %v6412_v35  ;;  %v6413_v32 = vunpack.c.h.bf16 %v5696_v50  ;;  %v6414_v63 = vunpack.c.l.bf16 %v5710_v37  ;;  %v6020_v38 = vpop.f32.mrb[11].mxu1 }
 0x221   : > { %v2910_v53 = vrot.slane %v2908_v31, 5  ;;  %v2914_v5 = vrot.slane %v2912_v3, 4  ;;  %v2882_v62 = vrot.slane %v2881_v30, 4  ;;  %v6018_v52 = vrot.slane %v2321_v49, 7  ;;  %6415 = vst [vmem:[#allocation35_spill] sm:$0xff] %v6020_v38 }
 0x222   : > { %v2580_v46 = vadd.f32 %v2485_v15, %v6413_v32  ;;  %v2588_v33 = vadd.f32 %v6414_v63, %v2492_v9  ;;  %v3628_v31 = vpack.c.bf16 %v2581_v58, %v2581_v58  ;;  %v2324_v54 = vmax.f32 %v2292_v55, 0.0 }
 0x223   : > { %v2911_v56 = vsel %vm5857_vm5, %v2906_v2, %v2910_v53  ;;  %v2915_v14 = vor.u32 %v2914_v5, %v2910_v53  ;;  %v6416_v30 = vunpack.c.l.bf16 %v5713_v10  ;;  %v6030_v15 = vadd.f32 %v5898_v51, %v5890_v47  ;;  %v6034_v53 = vpop.f32.mrb[140].mxu0 }
 0x224   : > { %3204 = vst [vmem:[%s5868_s17 + $0x28] sm:$0xf] %v2911_v56  ;;  %v3627_v3 = vpack.c.bf16 %v2580_v46, %v2580_v46  ;;  %v3635_v25 = vpack.c.bf16 %v2588_v33, %v2588_v33  ;;  %v2894_v35 = vshll.u32 %v3628_v31, 16  ;;  %v2493_v32 = vrot.slane %v2324_v54, 7  ;;  %v6036_v63 = vpop.f32.mrb[141].mxu0 }
 0x225   : > { %v2585_v50 = vadd.f32 %v6018_v52, %v6416_v30  ;;  %v2916_v49 = vrot.slane %v2915_v14, 4  ;;  %v4334_v2 = vadd.f32 %v5659_v20, %v5907_v36  ;;  %v6041_v14 = vpop.f32.mrb[12].mxu1  ;;  %v6043_v31 = vpop.f32.mrb[142].mxu0 }
 0x226   : > { %v2884_v55 = vshll.u32 %v3627_v3, 16  ;;  %v2888_v5 = vshrl.u32 %v3627_v3, 16  ;;  %v2947_v58 = vshrl.u32 %v3635_v25, 16  ;;  %v2950_v46 = vshll.u32 %v3635_v25, 16  ;;  %6417 = vst [vmem:[#allocation36_spill] sm:$0xff] %v6041_v14  ;;  %v6046_v25 = vpop.f32.mrb[13].mxu1 }
 0x227   : > { %v2921_v33 = vsel %vm5857_vm5, %v2916_v49, %v2920_v6  ;;  %v2896_v47 = vrot.slane %v2894_v35, 5  ;;  %v3632_v51 = vpack.c.bf16 %v2585_v50, %v2585_v50  ;;  %v2494_v56 = vsel %vm2470_vm2, %v2492_v9, %v2493_v32  ;;  %v6048_v30 = vpop.f32.mrb[143].mxu0  ;;  %v6054_v14 = vpop.f32.mrb[14].mxu1 }
 0x228   : > { %3205 = vst [vmem:[%s5868_s17 + $0x2c] sm:$0xf] %v2921_v33  ;;  %v2886_v20 = vrot.slane %v2884_v55, 5  ;;  %v2890_v36 = vrot.slane %v2888_v5, 4  ;;  %v2949_v54 = vrot.slane %v2947_v58, 4  ;;  %v2952_v3 = vrot.slane %v2950_v46, 5 }
 0x229   : > { %6418 = vst [vmem:[#allocation37_spill] sm:$0xff] %v6048_v30  ;;  %v2923_v38 = vshrl.u32 %v3632_v51, 16  ;;  %v2926_v6 = vshll.u32 %v3632_v51, 16  ;;  %v6419_v50 = vunpack.c.h.bf16 %v5710_v37  ;;  %v6420_v9 = vunpack.c.l.bf16 %v5720_v41  ;;  %6421 = vst [vmem:[#allocation38_spill] sm:$0xff] %v6054_v14  ;;  %v6059_v33 = vpop.f32.mrb[15].mxu1 }
 0x22a   : > { %v2887_v55 = vsel %vm5857_vm5, %v2882_v62, %v2886_v20  ;;  %v2891_v5 = vor.u32 %v2890_v36, %v2886_v20  ;;  %v2953_v58 = vor.u32 %v2952_v3, %v2949_v54  ;;  %v2290_v46 = vadd.f32 %v4334_v2, %v5763_v59 }
 0x22b   : > { %v2589_v49 = vadd.f32 %v6419_v50, %v2494_v56  ;;  %v2590_v35 = vadd.f32 %v2493_v32, %v6420_v9  ;;  %3202 = vst [vmem:[%s5868_s17 + $0x20] sm:$0xf] %v2887_v55  ;;  %v2925_v30 = vrot.slane %v2923_v38, 4  ;;  %v2928_v51 = vrot.slane %v2926_v6, 5 }
 0x22c   : > { %v2892_v50 = vrot.slane %v2891_v5, 4  ;;  %v2954_v41 = vrot.slane %v2953_v58, 4  ;;  %v2322_v32 = vmax.f32 %v2290_v46, 0.0  ;;  %v4336_v9 = vadd.f32 %v5516_v45, %v5823_v29  ;;  %v6424_v58 = vld [vmem:[#allocation5_spill] sm:$0xff] }
 0x22d   : > { %v3636_v37 = vpack.c.bf16 %v2589_v49, %v2589_v49  ;;  %v3637_v56 = vpack.c.bf16 %v2590_v35, %v2590_v35  ;;  %v2929_v14 = vor.u32 %v2928_v51, %v2925_v30  ;;  %v6069_v3 = vadd.f32 %v5925_v17, %v5919_v40 }
 0x22e   : > { %v2897_v2 = vsel %vm5857_vm5, %v2892_v50, %v2896_v47  ;;  %v2490_v54 = vrot.slane %v2322_v32, 7  ;;  %v4337_v38 = vadd.f32 %v4336_v9, %v5927_v39  ;;  %v6422_v30 = vunpack.c.l.bf16 %v5723_v24  ;;  %v6426_v9 = vld [vmem:[#allocation8_spill] sm:$0xff] }
 0x22f   : > { %v2956_v62 = vshll.u32 %v3636_v37, 16  ;;  %v2960_v20 = vshrl.u32 %v3636_v37, 16  ;;  %v2966_v36 = vshll.u32 %v3637_v56, 16  ;;  %3203 = vst [vmem:[%s5868_s17 + $0x24] sm:$0xf] %v2897_v2  ;;  %v2930_v6 = vrot.slane %v2929_v14, 4 }
 0x230   : > { %v2491_v29 = vsel %vm2470_vm2, %v6018_v52, %v2490_v54  ;;  %v2587_v55 = vadd.f32 %v2490_v54, %v6422_v30  ;;  %v2295_v47 = vadd.f32 %v4337_v38, %v5763_v59  ;;  %v4340_v39 = vadd.f32 %v5784_v48, %v5931_v26  ;;  %v6427_v54 = vld [vmem:[#allocation18_spill] sm:$0xff] }
 0x231   : > { %v2958_v49 = vrot.slane %v2956_v62, 5  ;;  %v2962_v35 = vrot.slane %v2960_v20, 4  ;;  %v2968_v45 = vrot.slane %v2966_v36, 5  ;;  %v6423_v14 = vunpack.c.h.bf16 %v5713_v10  ;;  %v6425_v10 = vld [vmem:[#allocation30_spill] sm:$0xff] }
 0x232   : > { %v4342_v46 = vadd.f32 %v6424_v58, %v5833_v23  ;;  %v3634_v52 = vpack.c.bf16 %v2587_v55, %v2587_v55  ;;  %v2327_v24 = vmax.f32 %v2295_v47, 0.0  ;;  %v2293_v51 = vadd.f32 %v4340_v39, %v5763_v59 }
 0x233   : > { %v2959_v40 = vsel %vm5857_vm5, %v2954_v41, %v2958_v49  ;;  %v2963_v17 = vor.u32 %v2962_v35, %v2958_v49  ;;  %v2586_v5 = vadd.f32 %v2491_v29, %v6423_v14  ;;  %v6089_v37 = vadd.f32 %v5933_v1, %v5929_v27 }
 0x234   : > { %3208 = vst [vmem:[%s5868_s17 + $0x38] sm:$0xf] %v2959_v40  ;;  %v4343_v56 = vadd.f32 %v4342_v46, %v5937_v44  ;;  %v4346_v50 = vadd.f32 %v6425_v10, %v5939_v57  ;;  %v2942_v41 = vshll.u32 %v3634_v52, 16  ;;  %v2498_v32 = vrot.slane %v2327_v24, 7 }
 0x235   : > { %v2964_v48 = vrot.slane %v2963_v17, 4  ;;  %v3633_v26 = vpack.c.bf16 %v2586_v5, %v2586_v5  ;;  %v2325_v23 = vmax.f32 %v2293_v51, 0.0  ;;  %v4348_v62 = vadd.f32 %v6426_v9, %v5974_v61 }
 0x236   : > { %v2296_v27 = vadd.f32 %v4343_v56, %v5763_v59  ;;  %v2944_v1 = vrot.slane %v2942_v41, 5  ;;  %v6428_v44 = vunpack.c.l.bf16 %v6427_v54  ;;  %v2294_v49 = vadd.f32 %v4346_v50, %v5763_v59  ;;  %v6431_v56 = vld [vmem:[#allocation20_spill] sm:$0xff] }
 0x237   : > { %v2969_v20 = vsel %vm5857_vm5, %v2964_v48, %v2968_v45  ;;  %v2932_v36 = vshll.u32 %v3633_v26, 16  ;;  %v2936_v2 = vshrl.u32 %v3633_v26, 16  ;;  %v2495_v57 = vrot.slane %v2325_v23, 7  ;;  %v6429_v45 = vld [vmem:[#allocation19_spill] sm:$0xff] }
 0x238   : > { %3209 = vst [vmem:[%s5868_s17 + $0x3c] sm:$0xf] %v2969_v20  ;;  %v2594_v38 = vadd.f32 %v6428_v44, %v2498_v32  ;;  %v2328_v30 = vmax.f32 %v2296_v27, 0.0  ;;  %v4349_v61 = vadd.f32 %v4348_v62, %v5956_v0  ;;  %v6430_v47 = vunpack.c.l.bf16 %v6429_v45 }
 0x239   : > { %v2934_v35 = vrot.slane %v2932_v36, 5  ;;  %v2938_v29 = vrot.slane %v2936_v2, 4  ;;  %v2326_v40 = vmax.f32 %v2294_v49, 0.0  ;;  %v6108_v17 = vadd.f32 %v5949_v28, %v5943_v19 }
 0x23a   : > { %v3641_v55 = vpack.c.bf16 %v2594_v38, %v2594_v38  ;;  %v2591_v39 = vadd.f32 %v2495_v57, %v6430_v47  ;;  %v2499_v58 = vrot.slane %v2328_v30, 7  ;;  %v2299_v46 = vadd.f32 %v4349_v61, %v5763_v59  ;;  %v6435_v30 = vld [vmem:[#allocation21_spill] sm:$0xff] }
 0x23b   : > { %v2935_v14 = vsel %vm5857_vm5, %v2930_v6, %v2934_v35  ;;  %v2939_v5 = vor.u32 %v2938_v29, %v2934_v35  ;;  %v2496_v51 = vrot.slane %v2326_v40, 7  ;;  %v6432_v10 = vunpack.c.l.bf16 %v6431_v56  ;;  %v6437_v40 = vld [vmem:[#allocation34_spill] sm:$0xff] }
 0x23c   : > { %3206 = vst [vmem:[%s5868_s17 + $0x30] sm:$0xf] %v2935_v14  ;;  %v2995_v52 = vshrl.u32 %v3641_v55, 16  ;;  %v2998_v0 = vshll.u32 %v3641_v55, 16  ;;  %v3638_v24 = vpack.c.bf16 %v2591_v39, %v2591_v39  ;;  %v2500_v26 = vsel %vm2470_vm2, %v2498_v32, %v2499_v58  ;;  %v6438_v14 = vld [vmem:[#allocation6_spill] sm:$0xff] }
 0x23d   : > { %v2940_v48 = vrot.slane %v2939_v5, 4  ;;  %v2596_v19 = vadd.f32 %v2499_v58, %v6432_v10  ;;  %v2331_v28 = vmax.f32 %v2299_v46, 0.0  ;;  %v6433_v62 = vunpack.c.h.bf16 %v6427_v54 }
 0x23e   : > { %v2997_v50 = vrot.slane %v2995_v52, 4  ;;  %v3000_v41 = vrot.slane %v2998_v0, 5  ;;  %v2971_v6 = vshrl.u32 %v3638_v24, 16  ;;  %v2974_v23 = vshll.u32 %v3638_v24, 16 }
 0x23f   : > { %v2945_v9 = vsel %vm5857_vm5, %v2940_v48, %v2944_v1  ;;  %v2595_v20 = vadd.f32 %v6433_v62, %v2500_v26  ;;  %v3643_v36 = vpack.c.bf16 %v2596_v19, %v2596_v19  ;;  %v2497_v2 = vsel %vm2470_vm2, %v2495_v57, %v2496_v51  ;;  %v6439_v48 = vld [vmem:[#allocation22_spill] sm:$0xff] }
 0x240   : > { %3207 = vst [vmem:[%s5868_s17 + $0x34] sm:$0xf] %v2945_v9  ;;  %v3001_v27 = vor.u32 %v3000_v41, %v2997_v50  ;;  %v2973_v32 = vrot.slane %v2971_v6, 4  ;;  %v2976_v44 = vrot.slane %v2974_v23, 5  ;;  %v6434_v38 = vunpack.c.h.bf16 %v6429_v45  ;;  %v6441_v23 = vld [vmem:[#allocation9_spill] sm:$0xff] }
 0x241   : > { %v3642_v35 = vpack.c.bf16 %v2595_v20, %v2595_v20  ;;  %v3014_v29 = vshll.u32 %v3643_v36, 16  ;;  %v6436_v61 = vunpack.c.l.bf16 %v6435_v30  ;;  %v6127_v47 = vrot.slane %v2331_v28, 7 }
 0x242   : > { %v2592_v49 = vadd.f32 %v2497_v2, %v6434_v38  ;;  %v3002_v1 = vrot.slane %v3001_v27, 4  ;;  %v2977_v54 = vor.u32 %v2976_v44, %v2973_v32  ;;  %v4351_v57 = vadd.f32 %v6438_v14, %v6437_v40  ;;  %v6443_v14 = vld [vmem:[#allocation12_spill] sm:$0xff] }
 0x243   : > { %v2593_v55 = vadd.f32 %v2496_v51, %v6436_v61  ;;  %v3004_v5 = vshll.u32 %v3642_v35, 16  ;;  %v3008_v58 = vshrl.u32 %v3642_v35, 16  ;;  %v3016_v46 = vrot.slane %v3014_v29, 5 }
 0x244   : > { %v3639_v39 = vpack.c.bf16 %v2592_v49, %v2592_v49  ;;  %v2978_v0 = vrot.slane %v2977_v54, 4  ;;  %v6440_v26 = vunpack.c.l.bf16 %v6439_v48  ;;  %v4352_v28 = vadd.f32 %v4351_v57, %v5964_v7 }
 0x245   : > { %v3640_v52 = vpack.c.bf16 %v2593_v55, %v2593_v55  ;;  %v3006_v56 = vrot.slane %v3004_v5, 5  ;;  %v3010_v10 = vrot.slane %v3008_v58, 4  ;;  %v4354_v9 = vadd.f32 %v6441_v23, %v6030_v15  ;;  %v6442_v55 = vld [vmem:[#allocation7_spill] sm:$0xff] }
 0x246   : > { %v2980_v45 = vshll.u32 %v3639_v39, 16  ;;  %v2984_v24 = vshrl.u32 %v3639_v39, 16  ;;  %v2600_v51 = vadd.f32 %v6440_v26, %v6127_v47  ;;  %v2297_v2 = vadd.f32 %v4352_v28, %v5763_v59 }
 0x247   : > { %v2990_v19 = vshll.u32 %v3640_v52, 16  ;;  %v3007_v62 = vsel %vm5857_vm5, %v3002_v1, %v3006_v56  ;;  %v3011_v20 = vor.u32 %v3010_v10, %v3006_v56  ;;  %v4355_v15 = vadd.f32 %v4354_v9, %v5976_v13 }
 0x248   : > { %v2982_v50 = vrot.slane %v2980_v45, 5  ;;  %v2986_v41 = vrot.slane %v2984_v24, 4  ;;  %v3647_v6 = vpack.c.bf16 %v2600_v51, %v2600_v51  ;;  %3212 = vst [vmem:[%s5868_s17 + $0x48] sm:$0xf] %v3007_v62  ;;  %v2329_v49 = vmax.f32 %v2297_v2, 0.0  ;;  %v6447_v51 = vld [vmem:[#allocation13_spill] sm:$0xff] }
 0x249   : > { %v2992_v36 = vrot.slane %v2990_v19, 5  ;;  %v3012_v38 = vrot.slane %v3011_v20, 4  ;;  %v4074_v35 = vadd.f32 %v5966_v43, %v5958_v42  ;;  %v4357_v1 = vadd.f32 %v6442_v55, %v5954_v22  ;;  %v6444_v22 = vld [vmem:[#allocation23_spill] sm:$0xff] }
 0x24a   : > { %v2983_v27 = vsel %vm5857_vm5, %v2978_v0, %v2982_v50  ;;  %v2987_v32 = vor.u32 %v2986_v41, %v2982_v50  ;;  %v3043_v7 = vshrl.u32 %v3647_v6, 16  ;;  %v3046_v44 = vshll.u32 %v3647_v6, 16 }
 0x24b   : > { %3210 = vst [vmem:[%s5868_s17 + $0x40] sm:$0xf] %v2983_v27  ;;  %v3017_v54 = vsel %vm5857_vm5, %v3012_v38, %v3016_v46  ;;  %v2501_v39 = vrot.slane %v2329_v49, 7  ;;  %v2300_v40 = vadd.f32 %v4355_v15, %v5763_v59  ;;  %v4360_v57 = vadd.f32 %v6443_v14, %v6108_v17  ;;  %v6446_v17 = vld [vmem:[#allocation10_spill] sm:$0xff] }
 0x24c   : > { %v2988_v29 = vrot.slane %v2987_v32, 4  ;;  %v3045_v30 = vrot.slane %v3043_v7, 4  ;;  %v3048_v61 = vrot.slane %v3046_v44, 5  ;;  %3213 = vst [vmem:[%s5868_s17 + $0x4c] sm:$0xf] %v3017_v54  ;;  %v4358_v43 = vadd.f32 %v4357_v1, %v5984_v11  ;;  %v6452_v44 = vld [vmem:[#allocation25_spill] sm:$0xff] }
 0x24d   : > { %v6160_v5 = vadd.f32 %v5998_v16, %v5995_v60  ;;  %v6445_v58 = vunpack.c.l.bf16 %v6444_v22  ;;  %v2332_v52 = vmax.f32 %v2300_v40, 0.0  ;;  %v4361_v0 = vadd.f32 %v4360_v57, %v6000_v12  ;;  %v6455_v54 = vld [vmem:[#allocation26_spill] sm:$0xff] }
 0x24e   : > { %v2993_v13 = vsel %vm5857_vm5, %v2988_v29, %v2992_v36  ;;  %v3049_v42 = vor.u32 %v3048_v61, %v3045_v30  ;;  %v4363_v45 = vadd.f32 %v6446_v17, %v6069_v3  ;;  %v2298_v26 = vadd.f32 %v4358_v43, %v5763_v59  ;;  %v6448_v3 = vld [vmem:[#allocation11_spill] sm:$0xff] }
 0x24f   : > { %3211 = vst [vmem:[%s5868_s17 + $0x44] sm:$0xf] %v2993_v13  ;;  %v2597_v46 = vadd.f32 %v2501_v39, %v6445_v58  ;;  %v4366_v56 = vadd.f32 %v6447_v51, %v4074_v35  ;;  %v6172_v11 = vadd.f32 %v6007_v34, %v6002_v18  ;;  %v2505_v16 = vrot.slane %v2332_v52, 7  ;;  %v6449_v34 = vld [vmem:[#allocation24_spill] sm:$0xff] }
 0x250   : > { %v3050_v24 = vrot.slane %v3049_v42, 4  ;;  %v2303_v10 = vadd.f32 %v4361_v0, %v5763_v59  ;;  %v4364_v19 = vadd.f32 %v4363_v45, %v6005_v4  ;;  %v2330_v28 = vmax.f32 %v2298_v26, 0.0  ;;  %v6457_v0 = vld [vmem:[#allocation27_spill] sm:$0xff] }
 0x251   : > { %v3644_v60 = vpack.c.bf16 %v2597_v46, %v2597_v46  ;;  %v4367_v12 = vadd.f32 %v4366_v56, %v6012_v21  ;;  %v4369_v50 = vadd.f32 %v6448_v3, %v6089_v37  ;;  %v6181_v41 = vadd.f32 %v6036_v63, %v6034_v53 }
 0x252   : > { %v2506_v18 = vsel %vm2470_vm2, %v6127_v47, %v2505_v16  ;;  %v6450_v9 = vunpack.c.l.bf16 %v6449_v34  ;;  %v6451_v4 = vunpack.c.h.bf16 %v6439_v48  ;;  %v2502_v36 = vrot.slane %v2330_v28, 7 }
 0x253   : > { %v3019_v6 = vshrl.u32 %v3644_v60, 16  ;;  %v3022_v23 = vshll.u32 %v3644_v60, 16  ;;  %v2335_v21 = vmax.f32 %v2303_v10, 0.0  ;;  %v2301_v2 = vadd.f32 %v4364_v19, %v5763_v59 }
 0x254   : > { %v2602_v62 = vadd.f32 %v2505_v16, %v6450_v9  ;;  %v2601_v20 = vadd.f32 %v6451_v4, %v2506_v18  ;;  %v2304_v53 = vadd.f32 %v4367_v12, %v5763_v59  ;;  %v2503_v7 = vsel %vm2470_vm2, %v2501_v39, %v2502_v36  ;;  %v6459_v18 = vld [vmem:[#allocation35_spill] sm:$0xff] }
 0x255   : > { %v3021_v37 = vrot.slane %v3019_v6, 4  ;;  %v3024_v27 = vrot.slane %v3022_v23, 5  ;;  %v6453_v47 = vunpack.c.l.bf16 %v6452_v44  ;;  %v2510_v49 = vrot.slane %v2335_v21, 7 }
 0x256   : > { %v3649_v32 = vpack.c.bf16 %v2602_v62, %v2602_v62  ;;  %v3648_v63 = vpack.c.bf16 %v2601_v20, %v2601_v20  ;;  %v6454_v48 = vunpack.c.h.bf16 %v6444_v22  ;;  %v2333_v30 = vmax.f32 %v2301_v2, 0.0  ;;  %v6460_v2 = vld [vmem:[#allocation28_spill] sm:$0xff] }
 0x257   : > { %v2599_v38 = vadd.f32 %v2502_v36, %v6453_v47  ;;  %v3025_v15 = vor.u32 %v3024_v27, %v3021_v37  ;;  %v6456_v40 = vunpack.c.l.bf16 %v6455_v54  ;;  %v6458_v17 = vunpack.c.l.bf16 %v6457_v0 }
 0x258   : > { %v3062_v35 = vshll.u32 %v3649_v32, 16  ;;  %v2598_v29 = vadd.f32 %v2503_v7, %v6454_v48  ;;  %v3052_v61 = vshll.u32 %v3648_v63, 16  ;;  %v3056_v55 = vshrl.u32 %v3648_v63, 16 }
 0x259   : > { %v3646_v1 = vpack.c.bf16 %v2599_v38, %v2599_v38  ;;  %v2606_v14 = vadd.f32 %v6456_v40, %v2510_v49  ;;  %v3026_v59 = vrot.slane %v3025_v15, 4  ;;  %v6198_v13 = vrot.slane %v2333_v30, 7  ;;  %v4589_v38 = vld [vmem:[%s6338_s2] ss:$0 sm:$0xff]  ;;  %v6464_v30 = vld [vmem:[#allocation14_spill] sm:$0xff] }
 0x25a   : > { %v3064_v57 = vrot.slane %v3062_v35, 5  ;;  %v3645_v39 = vpack.c.bf16 %v2598_v29, %v2598_v29  ;;  %v3054_v42 = vrot.slane %v3052_v61, 5  ;;  %v3058_v43 = vrot.slane %v3056_v55, 4  ;;  %v6228_v55 = vld [vmem:[%s4819_s7 + $0xb4] sm:$0xff]  }
 0x25b   : > { %v3038_v58 = vshll.u32 %v3646_v1, 16  ;;  %v3653_v46 = vpack.c.bf16 %v2606_v14, %v2606_v14  ;;  %v2603_v45 = vadd.f32 %v6198_v13, %v6458_v17  ;;  %v2336_v26 = vmax.f32 %v2304_v53, 0.0 }
 0x25c   : > { %v3028_v52 = vshll.u32 %v3645_v39, 16  ;;  %v3032_v22 = vshrl.u32 %v3645_v39, 16  ;;  %v3055_v51 = vsel %vm5857_vm5, %v3050_v24, %v3054_v42  ;;  %v3059_v56 = vor.u32 %v3058_v43, %v3054_v42  ;;  %v6466_v43 = vld [vmem:[#allocation37_spill] sm:$0xff] }
 0x25d   : > { %v3040_v60 = vrot.slane %v3038_v58, 5  ;;  %v3091_v16 = vshrl.u32 %v3653_v46, 16  ;;  %3216 = vst [vmem:[%s5868_s17 + $0x58] sm:$0xf] %v3055_v51  ;;  %v3094_v28 = vshll.u32 %v3653_v46, 16  ;;  %v3650_v12 = vpack.c.bf16 %v2603_v45, %v2603_v45  ;;  %v6467_v51 = vld [vmem:[#allocation17_spill] sm:$0xff] }
 0x25e   : > { %v3030_v10 = vrot.slane %v3028_v52, 5  ;;  %v3034_v19 = vrot.slane %v3032_v22, 4  ;;  %v3060_v3 = vrot.slane %v3059_v56, 4  ;;  %v2511_v23 = vrot.slane %v2336_v26, 7 }
 0x25f   : > { %v3093_v6 = vrot.slane %v3091_v16, 4  ;;  %v4370_v34 = vadd.f32 %v4369_v50, %v6459_v18  ;;  %v3096_v24 = vrot.slane %v3094_v28, 5  ;;  %v3067_v4 = vshrl.u32 %v3650_v12, 16  ;;  %v6468_v16 = vld [vmem:[#allocation29_spill] sm:$0xff] }
 0x260   : > { %v3031_v9 = vsel %vm5857_vm5, %v3026_v59, %v3030_v10  ;;  %v3035_v62 = vor.u32 %v3034_v19, %v3030_v10  ;;  %v3065_v20 = vsel %vm5857_vm5, %v3060_v3, %v3064_v57  ;;  %v3070_v36 = vshll.u32 %v3650_v12, 16  ;;  %v6465_v59 = vld [vmem:[#allocation36_spill] sm:$0xff] }
 0x261   : > { %3214 = vst [vmem:[%s5868_s17 + $0x50] sm:$0xf] %v3031_v9  ;;  %v2512_v21 = vsel %vm2470_vm2, %v2510_v49, %v2511_v23  ;;  %v6461_v37 = vunpack.c.l.bf16 %v6460_v2  ;;  %3217 = vst [vmem:[%s5868_s17 + $0x5c] sm:$0xf] %v3065_v20  ;;  %v3097_v32 = vor.u32 %v3096_v24, %v3093_v6  ;;  %v3069_v53 = vrot.slane %v3067_v4, 4  ;;  %v6463_v49 = vld [vmem:[#allocation16_spill] sm:$0xff] }
 0x262   : > { %v3036_v50 = vrot.slane %v3035_v62, 4  ;;  %v6462_v63 = vunpack.c.h.bf16 %v6455_v54  ;;  %v3072_v44 = vrot.slane %v3070_v36, 5  ;;  %v2302_v15 = vadd.f32 %v4589_v38, %v4370_v34 }
 0x263   : > { %v2608_v27 = vadd.f32 %v2511_v23, %v6461_v37  ;;  %v4372_v35 = vadd.f32 %v6463_v49, %v6181_v41  ;;  %v4375_v61 = vadd.f32 %v6464_v30, %v6160_v5  ;;  %v2433_v1 = vunpack.c.h.bf16 %v6228_v55  ;;  %v6473_v37 = vld [vmem:[#allocation31_spill] sm:$0xff] }
 0x264   : > { %v2607_v7 = vadd.f32 %v6462_v63, %v2512_v21  ;;  %v3041_v48 = vsel %vm5857_vm5, %v3036_v50, %v3040_v60  ;;  %v3098_v54 = vrot.slane %v3097_v32, 4  ;;  %v3073_v40 = vor.u32 %v3072_v44, %v3069_v53  ;;  %v3557_v21 = vld [vmem:[%s4819_s7 + $0xbc] sm:$0x1]  ;;  %v6475_v44 = vld [vmem:[#allocation32_spill] sm:$0xff]  ;;  %s3662_s7 = sshll.u32 %s4699_s16, 11  ;;  %s6295_s16 = scalar_lea.sflag [#allocation3], %s161_s10 }
 0x265   : > { %v3655_v47 = vpack.c.bf16 %v2608_v27, %v2608_v27  ;;  %3215 = vst [vmem:[%s5868_s17 + $0x54] sm:$0xf] %v3041_v48  ;;  %v2334_v14 = vmax.f32 %v2302_v15, 0.0  ;;  %v4373_v57 = vadd.f32 %v4372_v35, %v6465_v59  ;;  %v4376_v41 = vadd.f32 %v4375_v61, %v6046_v25  ;;  %s6285_s27 = scalar_lea.hbm %s6339_s3, %s3662_s7 }
 0x266   : > { %v3654_v29 = vpack.c.bf16 %v2607_v7, %v2607_v7  ;;  %v4086_v58 = vadd.f32 %v6466_v43, %v6043_v31  ;;  %v3074_v46 = vrot.slane %v3073_v40, 4  ;;  %v6469_v10 = vunpack.c.l.bf16 %v6468_v16  ;;  %v6470_v31 = vld [vmem:[#allocation15_spill] sm:$0xff] }
 0x267   : > { %v3110_v5 = vshll.u32 %v3655_v47, 16  ;;  %v2508_v52 = vrot.slane %v2334_v14, 7  ;;  %v2307_v22 = vadd.f32 %v4589_v38, %v4373_v57  ;;  %v2305_v26 = vadd.f32 %v4589_v38, %v4376_v41 }
 0x268   : > { %v3100_v39 = vshll.u32 %v3654_v29, 16  ;;  %v3104_v42 = vshrl.u32 %v3654_v29, 16  ;;  %v4378_v56 = vadd.f32 %v6467_v51, %v4086_v58  ;;  %v4381_v28 = vadd.f32 %v6470_v31, %v6172_v11 }
 0x269   : > { %v2509_v60 = vsel %vm2470_vm2, %v6198_v13, %v2508_v52  ;;  %v2605_v19 = vadd.f32 %v2508_v52, %v6469_v10  ;;  %v2339_v25 = vmax.f32 %v2307_v22, 0.0  ;;  %v6471_v6 = vunpack.c.h.bf16 %v6457_v0  ;;  %v6472_v13 = vld [vmem:[#allocation38_spill] sm:$0xff]  ;;  %v6477_v52 = vld [vmem:[#allocation33_spill] sm:$0xff] }
 0x26a   : > { %v3102_v17 = vrot.slane %v3100_v39, 5  ;;  %v3106_v45 = vrot.slane %v3104_v42, 4  ;;  %v2337_v18 = vmax.f32 %v2305_v26, 0.0  ;;  %v4379_v62 = vadd.f32 %v4378_v56, %v6472_v13 }
 0x26b   : > { %v2604_v23 = vadd.f32 %v2509_v60, %v6471_v6  ;;  %v3652_v34 = vpack.c.bf16 %v2605_v19, %v2605_v19  ;;  %v2516_v9 = vrot.slane %v2339_v25, 7  ;;  %v4382_v24 = vadd.f32 %v4381_v28, %v6059_v33 }
 0x26c   : > { %v3103_v12 = vsel %vm5857_vm5, %v3098_v54, %v3102_v17  ;;  %v3107_v3 = vor.u32 %v3106_v45, %v3102_v17  ;;  %v3112_v20 = vrot.slane %v3110_v5, 5  ;;  %v2513_v11 = vrot.slane %v2337_v18, 7 }
 0x26d   : > { %3220 = vst [vmem:[%s5868_s17 + $0x68] sm:$0xf] %v3103_v12  ;;  %v3651_v36 = vpack.c.bf16 %v2604_v23, %v2604_v23  ;;  %v3086_v2 = vshll.u32 %v3652_v34, 16  ;;  %v6474_v27 = vunpack.c.l.bf16 %v6473_v37  ;;  %v2308_v0 = vadd.f32 %v4589_v38, %v4379_v62 }
 0x26e   : > { %v3108_v4 = vrot.slane %v3107_v3, 4  ;;  %v2306_v32 = vadd.f32 %v4589_v38, %v4382_v24  ;;  %v6476_v47 = vunpack.c.l.bf16 %v6475_v44  ;;  %v2434_v48 = vunpack.c.l.bf16 %v3557_v21 }
 0x26f   : > { %v2612_v50 = vadd.f32 %v6474_v27, %v2516_v9  ;;  %v3076_v63 = vshll.u32 %v3651_v36, 16  ;;  %v3080_v7 = vshrl.u32 %v3651_v36, 16  ;;  %v2340_v49 = vmax.f32 %v2308_v0, 0.0 }
 0x270   : > { %v3113_v53 = vsel %vm5857_vm5, %v3108_v4, %v3112_v20  ;;  %v2609_v15 = vadd.f32 %v2513_v11, %v6476_v47  ;;  %v2338_v35 = vmax.f32 %v2306_v32, 0.0  ;;  %v3088_v61 = vrot.slane %v3086_v2, 5 }
 0x271   : > { %3221 = vst [vmem:[%s5868_s17 + $0x6c] sm:$0xf] %v3113_v53  ;;  %v3659_v33 = vpack.c.bf16 %v2612_v50, %v2612_v50  ;;  %v3078_v29 = vrot.slane %v3076_v63, 5  ;;  %v3082_v30 = vrot.slane %v3080_v7, 4  ;;  %v2517_v14 = vrot.slane %v2340_v49, 7 }
 0x272   : > { %v3656_v54 = vpack.c.bf16 %v2609_v15, %v2609_v15  ;;  %v2514_v59 = vrot.slane %v2338_v35, 7  ;;  %v6478_v22 = vunpack.c.l.bf16 %v6477_v52  ;;  %v6479_v56 = vunpack.c.h.bf16 %v6473_v37 }
 0x273   : > { %v3139_v40 = vshrl.u32 %v3659_v33, 16  ;;  %v3142_v38 = vshll.u32 %v3659_v33, 16  ;;  %v3079_v57 = vsel %vm5857_vm5, %v3074_v46, %v3078_v29  ;;  %v3083_v39 = vor.u32 %v3082_v30, %v3078_v29 }
 0x274   : > { %v3115_v42 = vshrl.u32 %v3656_v54, 16  ;;  %v3118_v41 = vshll.u32 %v3656_v54, 16  ;;  %3218 = vst [vmem:[%s5868_s17 + $0x60] sm:$0xf] %v3079_v57  ;;  %v2518_v5 = vsel %vm2470_vm2, %v2516_v9, %v2517_v14  ;;  %v2614_v17 = vadd.f32 %v2517_v14, %v6478_v22 }
 0x275   : > { %v3141_v43 = vrot.slane %v3139_v40, 4  ;;  %v3144_v58 = vrot.slane %v3142_v38, 5  ;;  %v3084_v45 = vrot.slane %v3083_v39, 4  ;;  %v2613_v60 = vadd.f32 %v6479_v56, %v2518_v5 }
 0x276   : > { %v3117_v26 = vrot.slane %v3115_v42, 4  ;;  %v3120_v51 = vrot.slane %v3118_v41, 5  ;;  %v3661_v46 = vpack.c.bf16 %v2614_v17, %v2614_v17  ;;  %v2515_v10 = vsel %vm2470_vm2, %v2513_v11, %v2514_v59 }
 0x277   : > { %v3145_v16 = vor.u32 %v3144_v58, %v3141_v43  ;;  %v2611_v19 = vadd.f32 %v2514_v59, %v2434_v48  ;;  %v3089_v25 = vsel %vm5857_vm5, %v3084_v45, %v3088_v61  ;;  %v3660_v28 = vpack.c.bf16 %v2613_v60, %v2613_v60 }
 0x278   : > { %v3121_v31 = vor.u32 %v3120_v51, %v3117_v26  ;;  %v2610_v12 = vadd.f32 %v2515_v10, %v2433_v1  ;;  %3219 = vst [vmem:[%s5868_s17 + $0x64] sm:$0xf] %v3089_v25  ;;  %v3158_v13 = vshll.u32 %v3661_v46, 16 }
 0x279   : > { %v3658_v3 = vpack.c.bf16 %v2611_v19, %v2611_v19  ;;  %v3146_v6 = vrot.slane %v3145_v16, 4  ;;  %v3148_v23 = vshll.u32 %v3660_v28, 16  ;;  %v3152_v18 = vshrl.u32 %v3660_v28, 16 }
 0x27a   : > { %v3657_v34 = vpack.c.bf16 %v2610_v12, %v2610_v12  ;;  %v3122_v9 = vrot.slane %v3121_v31, 4  ;;  %v3160_v37 = vrot.slane %v3158_v13, 5 }
 0x27b   : > { %v3150_v62 = vrot.slane %v3148_v23, 5  ;;  %v3154_v24 = vrot.slane %v3152_v18, 4  ;;  %v3134_v36 = vshll.u32 %v3658_v3, 16 }
 0x27c   : > { %v3124_v4 = vshll.u32 %v3657_v34, 16  ;;  %v3128_v20 = vshrl.u32 %v3657_v34, 16 }
 0x27d   : > { %v3151_v55 = vsel %vm5857_vm5, %v3146_v6, %v3150_v62  ;;  %v3155_v1 = vor.u32 %v3154_v24, %v3150_v62  ;;  %v3136_v53 = vrot.slane %v3134_v36, 5 }
 0x27e   : > { %v3126_v11 = vrot.slane %v3124_v4, 5  ;;  %v3130_v21 = vrot.slane %v3128_v20, 4  ;;  %3224 = vst [vmem:[%s5868_s17 + $0x78] sm:$0xf] %v3151_v55 }
 0x27f   : > { %v3156_v2 = vrot.slane %v3155_v1, 4 }
 0x280   : > { %v3127_v27 = vsel %vm5857_vm5, %v3122_v9, %v3126_v11  ;;  %v3131_v50 = vor.u32 %v3130_v21, %v3126_v11 }
 0x281   : > { %3222 = vst [vmem:[%s5868_s17 + $0x70] sm:$0xf] %v3127_v27  ;;  %v3161_v0 = vsel %vm5857_vm5, %v3156_v2, %v3160_v37 }
 0x282   : > { %v3132_v32 = vrot.slane %v3131_v50, 4  ;;  %3225 = vst [vmem:[%s5868_s17 + $0x7c] sm:$0xf] %v3161_v0 }
 0x284   : > { %v3137_v63 = vsel %vm5857_vm5, %v3132_v32, %v3136_v53 }
 0x285   : > { %3223 = vst [vmem:[%s5868_s17 + $0x74] sm:$0xf] %v3137_v63 }
 0x286   : > { %4604 = shalt.err (!%p4601_p3)
}
 0x287   : > { %s4605_s5 = scalar_lea.hbm %s6285_s27, 2048  ;;  %s4609_s9 = scalar_lea.hbm %s6339_s3, 4096 }
 0x288   : > { %p4606_p4 = scmp.ne.s32.totalorder %s6285_s27, %s4605_s5  ;;  %p4610_p9 = scmp.lt.u32.totalorder %s6285_s27, %s6339_s3 }
 0x289   : > { %p4611_p10 = scmp.lt.u32.totalorder %s4609_s9, %s4605_s5  ;;  %p4613_p12 = scmp.lt.u32.totalorder %s4605_s5, %s6285_s27 }
 0x28a   : > { %p4607_p7 = pnand %p4606_p4, %p4716_p5 }
 0x28b   : > { %p4612_p11 = por %p4611_p10, %p4610_p9 }
 0x28c   : > { %p4608_p8 = pneg %p4607_p7 }
 0x28d   : > { %p4614_p13 = por %p4613_p12, %p4612_p11 }
 0x28f   : > { %p4615_p0 = pnand %p4614_p13, %p4608_p8 }
 0x291   : > { %4618 = shalt.err (!%p4615_p0)
}
 0x292   : > { %s4656_s17 = smov 64   ;;  %s4657_s19 = smov 4  }
 0x293   : > { %4432 = dma.vmem_to_hbm [thread:$0]  (%p4716_p5), %s6287_s24, 2048, %s6285_s27, %s6295_s16, %s4656_s17, %s4656_s17, %s4657_s19  }
 0x294 PF: > { %p4438_p1 = scmp.ge.s32.totalorder %s4653_s15, 2  ;;  %s3255_s20 = sand.u32 1, %s4641_s12  }
 0x295   : > { %s3256_s7 = scalar_lea.sflag [#allocation3], %s3255_s20 }
 0x296   : > { %p4435_p2 = pnand %p4438_p1, %p4720_p6 }
 0x298   : > { %4636 = dma.done.wait (!%p4435_p2), %s3256_s7, 2048  }
 0x299   : > { %4638 = vsyncadd (!%p4435_p2), %s3256_s7, 4294965248  ;;  %p13_p3 = scmp.ge.s32.totalorder %s4703_s18, 4   ;;  %s6480_s12 = smov %s4645_s13 }
 0x29a   : > { %s6481_s13 = smov %s4649_s14  ;;  %s6482_s14 = smov %s4714_s21 }
 0x29b   : > { %s6483_s15 = smov %s4703_s18  ;;  %15 = sbr.rel (!%p13_p3) target bundleno = 3 (0x3), region = 70 }
 0x2a2   :  { %3261 = vsyncpa [#allocation3], 1 }
 0x2a3   :  { %3263 = vsyncpa [#allocation3 + $0x1], 1 }

</bundles_post_ra>
